<compile_context>
chip_gen: v5e
topology: v5e:2x2
jax: 0.10.0
libtpu: 0.0.40
codegen_flags: <defaults>
</compile_context>

<pallas_src>
import inspect

import jax
import jax.numpy as jnp
import numpy as np
from jax.experimental import pallas as pl
from jax.experimental.pallas import tpu as pltpu


_LANE = 128
_TK_QUANT = 512                      # keep K tiles 512-aligned (x lane dim / W1 sublane dim)
_VMEM_FRACTION = 0.72                # review: raise from 0.45 (v7x tk ~4.6K -> ~9K)
_VMEM_SLACK = 2 * 1024 * 1024        # review: shrink the 6 MiB slack; residents are now counted exactly

try:
    _HAS_BUFFERED = hasattr(pl, "Buffered") and (
        "pipeline_mode" in inspect.signature(pl.BlockSpec).parameters)
except Exception:  # pragma: no cover - defensive
    _HAS_BUFFERED = False


def _round_up(x, m):
    return (x + m - 1) // m * m


def _cdiv(a, b):
    return -(-a // b)


def _physical_vmem_bytes():
    """Physical VMEM per TensorCore; conservative fallback if the query fails."""
    try:
        info = pltpu.get_tpu_info()
        cap = int(getattr(info, "vmem_capacity_bytes", 0))
        if cap > 0:
            return cap
    except Exception:
        pass
    return 64 * 1024 * 1024  # v7x floor (64 MiB/TC); v5e/v6e have 128 MiB


def _num_tensorcores():
    """Best-effort TensorCores-per-chip (2 on v7x, 1 on v5e/v6e); 1 if unknown."""
    try:
        info = pltpu.get_tpu_info()
        for name in ("num_tensorcores", "tensorcores_per_chip", "num_cores",
                     "cores_per_chip", "core_count"):
            n = getattr(info, name, None)
            if isinstance(n, int) and 1 <= n <= 8:
                return min(n, 2)
    except Exception:
        pass
    return 1


# ---------------------------------------------------------------------------
# VMEM budgeting (explicitly accounts for every auto-pipelined buffer).
# ---------------------------------------------------------------------------
def _resident_bytes(H, O, resident_buffers):
    h_pad = _round_up(H, _LANE)
    o_pad = _round_up(O, _LANE)
    return resident_buffers * (8 * h_pad * 4                    # b1 (1,H) -> (8, h_pad)
                               + _round_up(H, 8) * o_pad * 4    # W2 (H,O) lane-padded
                               + 8 * o_pad * 4)                 # b2


def _vmem_usage(tk, H, O, B, weight_bytes, w1_buffers):
    h_pad = _round_up(H, _LANE)
    o_pad = _round_up(O, _LANE)
    sub = max(8, 32 // weight_bytes)              # sublane pad of the streaming dtype
    x_rows = _round_up(B, sub)
    b_rows = _round_up(B, 8)
    resident_buffers = 1 if _HAS_BUFFERED else 2
    use = w1_buffers * tk * h_pad * weight_bytes          # W1 stream
    use += 2 * x_rows * tk * weight_bytes                 # x stream (double buffered)
    use += _resident_bytes(H, O, resident_buffers)        # b1 / W2 / b2
    use += 2 * max(b_rows * o_pad, 8 * h_pad) * 4         # output block(s)
    use += b_rows * h_pad * 4                             # h_acc scratch (f32)
    return use


def _choose_tk(D, H, O, weight_bytes, w1_buffers, n_splits):
    """Largest 512-multiple K tile whose full VMEM footprint fits the budget."""
    h_pad = _round_up(H, _LANE)
    phys = _physical_vmem_bytes()
    fixed = _vmem_usage(0, H, O, 32, weight_bytes, w1_buffers) + _VMEM_SLACK
    budget = int(phys * _VMEM_FRACTION) - fixed
    x_rows = 32                                           # covers any small batch / dtype
    per_k = (w1_buffers * h_pad + 2 * x_rows) * weight_bytes
    tk = max(_TK_QUANT, budget // per_k // _TK_QUANT * _TK_QUANT)
    return int(min(tk, _round_up(_cdiv(D, n_splits), _TK_QUANT)))


def _vmem_limit_bytes(tk, H, O, B, weight_bytes, w1_buffers):
    usage = _vmem_usage(tk, H, O, B, weight_bytes, w1_buffers)
    phys = _physical_vmem_bytes()
    return int(min(max(usage + (8 << 20), 32 << 20), int(phys * 0.94)))


def _spec(shape, index_map, buffers=None):
    """BlockSpec with an optional explicit pipeline depth (default stays at 2)."""
    if buffers is not None and buffers != 2 and _HAS_BUFFERED:
        return pl.BlockSpec(shape, index_map, pipeline_mode=pl.Buffered(buffers))
    return pl.BlockSpec(shape, index_map)


# ---------------------------------------------------------------------------
# Kernels
# ---------------------------------------------------------------------------
def _mlp_fused_kernel(x_ref, w1_ref, b1_ref, w2_ref, b2_ref, out_ref, h_acc):
    """Single-TensorCore path: K-streamed fc1 + fused bias/ReLU/fc2/sigmoid epilogue."""
    k = pl.program_id(0)

    @pl.when(k == 0)
    def _():
        h_acc[...] = jnp.zeros_like(h_acc)

    # fc1 partial matmul on the MXU (bf16 x bf16 -> f32 accumulate by default).
    h_acc[...] += jnp.dot(x_ref[...], w1_ref[...],
                          preferred_element_type=jnp.float32)

    @pl.when(k == pl.num_programs(0) - 1)
    def _():
        h = jnp.maximum(h_acc[...] + b1_ref[...], 0.0)
        logits = jnp.dot(h, w2_ref[...], preferred_element_type=jnp.float32) + b2_ref[...]
        out_ref[...] = jax.nn.sigmoid(logits).astype(out_ref.dtype)


def _mlp_split_kernel(x_ref, w1_ref, hpart_ref, h_acc):
    """Multi-TensorCore path: each split streams its share of the fc1 reduction and
    emits a partial (B, H) pre-activation; the tiny epilogue runs in XLA afterwards."""
    k = pl.program_id(1)

    @pl.when(k == 0)
    def _():
        h_acc[...] = jnp.zeros_like(h_acc)

    h_acc[...] += jnp.dot(x_ref[...], w1_ref[...],
                          preferred_element_type=jnp.float32)

    @pl.when(k == pl.num_programs(1) - 1)
    def _():
        hpart_ref[...] = h_acc[...][None]


# ---------------------------------------------------------------------------
# Wrapper with one-time weight preparation
# ---------------------------------------------------------------------------
class PallasMLP:
    """sigmoid(relu(x @ W1 + b1) @ W2 + b2), fc1 weight streamed from HBM.

    W1 is cast to `compute_dtype` and zero-padded along the reduction dim ONCE at
    construction (the per-call astype/pad of the 714000x1029 weight was the #1
    perf problem).  Default compute_dtype=bf16 halves HBM bytes; accumulation is
    always f32 on the MXU.  Use compute_dtype=jnp.float32 for exact f32 numerics.
    """

    def __init__(self, w1, b1, w2, b2, *, compute_dtype=jnp.bfloat16,
                 tk=None, n_splits=None):
        w1 = jnp.asarray(w1)
        w2 = jnp.asarray(w2)
        D, H = w1.shape
        H2, O = w2.shape
        assert H2 == H

        weight_bytes = jnp.dtype(compute_dtype).itemsize
        phys = _physical_vmem_bytes()
        # 3-deep W1 pipeline only where VMEM has headroom (v5e/v6e: 128 MiB);
        # on v7x (64 MiB) the budget is better spent on a larger K tile.
        w1_buffers = 3 if (phys >= 100 * 1024 * 1024 and _HAS_BUFFERED) else 2
        if n_splits is None:
            n_splits = _num_tensorcores()
        n_splits = max(1, int(n_splits))
        if tk is None:
            tk = _choose_tk(D, H, O, weight_bytes, w1_buffers, n_splits)
        tk = max(_LANE, _round_up(int(tk), _LANE))

        n_k = _cdiv(_cdiv(D, n_splits), tk)
        D_pad = n_splits * n_k * tk

        self.D, self.H, self.O = D, H, O
        self.D_pad, self.tk, self.n_k, self.n_splits = D_pad, tk, n_k, n_splits
        self.compute_dtype = compute_dtype
        self.weight_bytes = weight_bytes
        self.w1_buffers = w1_buffers

        # ---- one-time weight prep: cast + zero-pad (zeros contribute nothing) ----
        w1p = w1.astype(compute_dtype)
        if D_pad != D:
            w1p = jnp.pad(w1p, ((0, D_pad - D), (0, 0)))
        self.w1 = w1p
        self.b1 = jnp.asarray(b1).astype(jnp.float32).reshape(1, H)
        self.w2 = w2.astype(jnp.float32)
        self.b2 = jnp.asarray(b2).astype(jnp.float32).reshape(1, O)

        self._fwd = jax.jit(self._forward)

    def __call__(self, x):
        return self._fwd(x, self.w1, self.b1, self.w2, self.b2)

    # traced under jit
    def _forward(self, x, w1, b1, w2, b2):
        B, D = x.shape
        assert D == self.D
        # Per-call activation prep only (x is tiny: <3 MB at the real 714000 width).
        x = x.astype(self.compute_dtype)
        if self.D_pad != D:
            x = jnp.pad(x, ((0, 0), (0, self.D_pad - D)))

        vmem_limit = _vmem_limit_bytes(self.tk, self.H, self.O, B,
                                       self.weight_bytes, self.w1_buffers)
        cost = pl.CostEstimate(
            flops=2 * B * self.D_pad * self.H + 2 * B * self.H * self.O,
            transcendentals=B * self.O,
            bytes_accessed=(x.size * x.dtype.itemsize
                            + w1.size * w1.dtype.itemsize
                            + (b1.size + w2.size + b2.size + B * self.O) * 4),
        )

        if self.n_splits == 1:
            return pl.pallas_call(
                _mlp_fused_kernel,
                out_shape=jax.ShapeDtypeStruct((B, self.O), jnp.float32),
                grid_spec=pltpu.PrefetchScalarGridSpec(
                    num_scalar_prefetch=0,
                    grid=(self.n_k,),
                    in_specs=[
                        pl.BlockSpec((B, self.tk), lambda k: (0, k)),        # x K-tile
                        _spec((self.tk, self.H), lambda k: (k, 0),
                              buffers=self.w1_buffers),                      # W1 stream
                        _spec((1, self.H), lambda k: (0, 0), buffers=1),     # b1 resident
                        _spec((self.H, self.O), lambda k: (0, 0), buffers=1),  # W2 resident
                        _spec((1, self.O), lambda k: (0, 0), buffers=1),     # b2 resident
                    ],
                    out_specs=pl.BlockSpec((B, self.O), lambda k: (0, 0)),
                    scratch_shapes=[pltpu.VMEM((B, self.H), jnp.float32)],
                ),
                compiler_params=pltpu.CompilerParams(
                    dimension_semantics=("arbitrary",),       # sequential K reduction
                    vmem_limit_bytes=vmem_limit,
                ),
                cost_estimate=cost,
            )(x, w1, b1, w2, b2)

        # Multi-TensorCore path: leading "parallel" axis splits the W1 stream
        # across cores (v7x); each split emits a partial (B, H) pre-activation.
        n_k = self.n_k
        hparts = pl.pallas_call(
            _mlp_split_kernel,
            out_shape=jax.ShapeDtypeStruct((self.n_splits, B, self.H), jnp.float32),
            grid_spec=pltpu.PrefetchScalarGridSpec(
                num_scalar_prefetch=0,
                grid=(self.n_splits, n_k),
                in_specs=[
                    pl.BlockSpec((B, self.tk), lambda s, k: (0, s * n_k + k)),
                    _spec((self.tk, self.H), lambda s, k: (s * n_k + k, 0),
                          buffers=self.w1_buffers),
                ],
                out_specs=pl.BlockSpec((1, B, self.H), lambda s, k: (s, 0, 0)),
                scratch_shapes=[pltpu.VMEM((B, self.H), jnp.float32)],
            ),
            compiler_params=pltpu.CompilerParams(
                dimension_semantics=("parallel", "arbitrary"),
                vmem_limit_bytes=vmem_limit,
            ),
            cost_estimate=cost,
        )(x, w1)
        # Tiny epilogue in XLA: combine partials, bias/ReLU/fc2/sigmoid (few KB).
        h = jnp.maximum(jnp.sum(hparts, axis=0) + b1, 0.0)
        return jax.nn.sigmoid(jnp.dot(h, w2) + b2)


# ---------------------------------------------------------------------------
# Reference / demo
# ---------------------------------------------------------------------------
def _init_linear(key, fan_in, fan_out):
    # torch.nn.Linear default U(-1/sqrt(fan_in), 1/sqrt(fan_in)) init, transposed
    # into the kernel's (in, out) layout.
    kw, kb = jax.random.split(key)
    bound = 1.0 / np.sqrt(fan_in)
    w = jax.random.uniform(kw, (fan_in, fan_out), jnp.float32, -bound, bound)
    b = jax.random.uniform(kb, (1, fan_out), jnp.float32, -bound, bound)
    return w, b


def _reference(x, w1, b1, w2, b2):
    h = jnp.maximum(x @ w1 + b1, 0.0)
    return jax.nn.sigmoid(h @ w2 + b2)


if __name__ == "__main__":
    # Real module: fc1 = Linear(85*8400 = 714000, 1029), fc2 = Linear(1029, 2).
    # Small stand-in input width here; the same K-streamed path handles the full
    # width (tk is VMEM-budgeted per TPU generation, W1 prep happens once).
    B = 2
    D_IN = 1300          # NOT a multiple of the K tile -> exercises ragged-K padding
    HIDDEN = 1029
    OUT = 2

    root = jax.random.PRNGKey(0)
    kx, k1, k2 = jax.random.split(root, 3)

    x = jax.random.normal(kx, (B, D_IN), dtype=jnp.float32)
    w1, b1 = _init_linear(k1, D_IN, HIDDEN)
    w2, b2 = _init_linear(k2, HIDDEN, OUT)

    ref_f32 = jax.block_until_ready(_reference(x, w1, b1, w2, b2))
    ref_bf16 = jax.block_until_ready(_reference(
        x.astype(jnp.bfloat16).astype(jnp.float32),
        w1.astype(jnp.bfloat16).astype(jnp.float32), b1, w2, b2))

    # 1) Fused single-core path, small explicit K tile -> multi-step accumulation.
    mlp_small = PallasMLP(w1, b1, w2, b2, tk=512, n_splits=1)
    out_small = jax.block_until_ready(mlp_small(x))

    # 2) Auto path: VMEM-budgeted tk, TensorCore count auto-detected.
    mlp_auto = PallasMLP(w1, b1, w2, b2)
    out_auto = jax.block_until_ready(mlp_auto(x))

    # 3) Explicit 2-way K split (the v7x dual-TC path; runs correctly, just
    #    sequentially, on 1-TC chips).
    mlp_split = PallasMLP(w1, b1, w2, b2, tk=512, n_splits=2)
    out_split = jax.block_until_ready(mlp_split(x))

    # 4) Full-f32 streaming path.
    mlp_f32 = PallasMLP(w1, b1, w2, b2, tk=512, n_splits=1, compute_dtype=jnp.float32)
    out_f32 = jax.block_until_ready(mlp_f32(x))

    for out in (out_small, out_auto, out_split, out_f32):
        assert out.shape == (B, OUT) and out.dtype == jnp.float32
    # Tolerances cover accumulation-order / matmul-pass differences only.
    assert np.allclose(np.asarray(out_f32), np.asarray(ref_f32), atol=2e-3, rtol=1e-3)
    for out in (out_small, out_auto, out_split):
        assert np.allclose(np.asarray(out), np.asarray(ref_bf16), atol=2e-3, rtol=1e-3)

    print("KERNEL_OK")
</pallas_src>

<mosaic_0001>
module attributes {stable_mosaic.version = 11 : i64} {
  func.func @_mlp_fused_kernel(%arg0: i32, %arg1: memref<2x512xbf16, #tpu.memory_space<vmem>>, %arg2: memref<512x1029xbf16, #tpu.memory_space<vmem>>, %arg3: memref<1x1029xf32, #tpu.memory_space<vmem>>, %arg4: memref<1029x2xf32, #tpu.memory_space<vmem>>, %arg5: memref<1x2xf32, #tpu.memory_space<vmem>>, %arg6: memref<2x2xf32, #tpu.memory_space<vmem>>, %arg7: memref<2x1029xf32, #tpu.memory_space<vmem>>) attributes {dimension_semantics = [#tpu.dimension_semantics<arbitrary>], iteration_bounds = array<i64: 3>, scalar_prefetch = 0 : i64, scratch_operands = 1 : i64, tpu.core_type = #tpu.core_type<tc>, window_params = [{transform_indices = @transform_0, window_bounds = array<i64: 2, 512>}, {transform_indices = @transform_1, window_bounds = array<i64: 512, 1029>}, {pipeline_mode = #tpu.pipeline_mode<synchronous>, transform_indices = @transform_2, window_bounds = array<i64: 1, 1029>}, {pipeline_mode = #tpu.pipeline_mode<synchronous>, transform_indices = @transform_3, window_bounds = array<i64: 1029, 2>}, {pipeline_mode = #tpu.pipeline_mode<synchronous>, transform_indices = @transform_4, window_bounds = array<i64: 1, 2>}, {pipeline_mode = #tpu.pipeline_mode<synchronous>, transform_indices = @transform_5, window_bounds = array<i64: 2, 2>}]} {
    %c0_i32 = arith.constant 0 : i32
    %0 = arith.cmpi eq, %arg0, %c0_i32 : i32
    %1 = arith.extui %0 : i1 to i32
    %c0_i32_0 = arith.constant 0 : i32
    %2 = arith.cmpi ne, %1, %c0_i32_0 : i32
    scf.if %2 {
      %cst_9 = arith.constant 0.000000e+00 : f32
      %12 = vector.broadcast %cst_9 : f32 to vector<2x1029xf32>
      %c0_10 = arith.constant 0 : index
      %c0_11 = arith.constant 0 : index
      %13 = vector.load %arg7[%c0_10, %c0_11] : memref<2x1029xf32, #tpu.memory_space<vmem>>, vector<2x1029xf32>
      tpu.vector_store %arg7[%c0_10, %c0_11], %12 {strides = array<i32>} : memref<2x1029xf32, #tpu.memory_space<vmem>>, vector<2x1029xf32>,
    } else {
    }
    %c0 = arith.constant 0 : index
    %c0_1 = arith.constant 0 : index
    %3 = vector.load %arg7[%c0, %c0_1] : memref<2x1029xf32, #tpu.memory_space<vmem>>, vector<2x1029xf32>
    %c0_2 = arith.constant 0 : index
    %c0_3 = arith.constant 0 : index
    %4 = vector.load %arg1[%c0_2, %c0_3] : memref<2x512xbf16, #tpu.memory_space<vmem>>, vector<2x512xbf16>
    %c0_4 = arith.constant 0 : index
    %c0_5 = arith.constant 0 : index
    %5 = vector.load %arg2[%c0_4, %c0_5] : memref<512x1029xbf16, #tpu.memory_space<vmem>>, vector<512x1029xbf16>
    %cst = arith.constant dense<0.000000e+00> : vector<2x1029xf32>
    %6 = tpu.matmul %4, %5, %cst {dimension_numbers = #tpu.dot_dimension_numbers<[1], [0], [0], [1], [0, 0, 1, 1], [], []>} : vector<2x512xbf16>, vector<512x1029xbf16>, vector<2x1029xf32> -> vector<2x1029xf32>
    %7 = arith.addf %3, %6 : vector<2x1029xf32>
    %c0_6 = arith.constant 0 : index
    %c0_7 = arith.constant 0 : index
    %8 = vector.load %arg7[%c0_6, %c0_7] : memref<2x1029xf32, #tpu.memory_space<vmem>>, vector<2x1029xf32>
    tpu.vector_store %arg7[%c0_6, %c0_7], %7 {strides = array<i32>} : memref<2x1029xf32, #tpu.memory_space<vmem>>, vector<2x1029xf32>,
    %c2_i32 = arith.constant 2 : i32
    %9 = arith.cmpi eq, %arg0, %c2_i32 : i32
    %10 = arith.extui %9 : i1 to i32
    %c0_i32_8 = arith.constant 0 : i32
    %11 = arith.cmpi ne, %10, %c0_i32_8 : i32
    scf.if %11 {
      %c0_9 = arith.constant 0 : index
      %c0_10 = arith.constant 0 : index
      %12 = vector.load %arg7[%c0_9, %c0_10] : memref<2x1029xf32, #tpu.memory_space<vmem>>, vector<2x1029xf32>
      %c0_11 = arith.constant 0 : index
      %c0_12 = arith.constant 0 : index
      %13 = vector.load %arg3[%c0_11, %c0_12] : memref<1x1029xf32, #tpu.memory_space<vmem>>, vector<1x1029xf32>
      %14 = vector.broadcast %13 : vector<1x1029xf32> to vector<2x1029xf32>
      %15 = arith.addf %12, %14 : vector<2x1029xf32>
      %cst_13 = arith.constant 0.000000e+00 : f32
      %16 = vector.broadcast %cst_13 : f32 to vector<2x1029xf32>
      %17 = arith.maximumf %15, %16 : vector<2x1029xf32>
      %c0_14 = arith.constant 0 : index
      %c0_15 = arith.constant 0 : index
      %18 = vector.load %arg4[%c0_14, %c0_15] : memref<1029x2xf32, #tpu.memory_space<vmem>>, vector<1029x2xf32>
      %cst_16 = arith.constant dense<0.000000e+00> : vector<2x2xf32>
      %19 = tpu.matmul %17, %18, %cst_16 {dimension_numbers = #tpu.dot_dimension_numbers<[1], [0], [0], [1], [0, 0, 1, 1], [], []>} : vector<2x1029xf32>, vector<1029x2xf32>, vector<2x2xf32> -> vector<2x2xf32>
      %c0_17 = arith.constant 0 : index
      %c0_18 = arith.constant 0 : index
      %20 = vector.load %arg5[%c0_17, %c0_18] : memref<1x2xf32, #tpu.memory_space<vmem>>, vector<1x2xf32>
      %21 = vector.broadcast %20 : vector<1x2xf32> to vector<2x2xf32>
      %22 = arith.addf %19, %21 : vector<2x2xf32>
      %23 = arith.negf %22 : vector<2x2xf32>
      %24 = math.exp %23 : vector<2x2xf32>
      %cst_19 = arith.constant 1.000000e+00 : f32
      %25 = vector.broadcast %cst_19 : f32 to vector<2x2xf32>
      %26 = arith.addf %25, %24 : vector<2x2xf32>
      %27 = arith.divf %25, %26 : vector<2x2xf32>
      %c0_20 = arith.constant 0 : index
      %c0_21 = arith.constant 0 : index
      %28 = vector.load %arg6[%c0_20, %c0_21] : memref<2x2xf32, #tpu.memory_space<vmem>>, vector<2x2xf32>
      tpu.vector_store %arg6[%c0_20, %c0_21], %27 {strides = array<i32>} : memref<2x2xf32, #tpu.memory_space<vmem>>, vector<2x2xf32>,
    } else {
    }
    return
  }
  func.func @transform_0(%arg0: i32) -> (i32, i32) {
    %c0_i32 = arith.constant 0 : i32
    %c0_i32_0 = arith.constant 0 : i32
    return %c0_i32, %arg0 : i32, i32
  }
  func.func @transform_1(%arg0: i32) -> (i32, i32) {
    %c0_i32 = arith.constant 0 : i32
    %c0_i32_0 = arith.constant 0 : i32
    return %arg0, %c0_i32 : i32, i32
  }
  func.func @transform_2(%arg0: i32) -> (i32, i32) {
    %c0_i32 = arith.constant 0 : i32
    %c0_i32_0 = arith.constant 0 : i32
    %c0_i32_1 = arith.constant 0 : i32
    return %c0_i32, %c0_i32_0 : i32, i32
  }
  func.func @transform_3(%arg0: i32) -> (i32, i32) {
    %c0_i32 = arith.constant 0 : i32
    %c0_i32_0 = arith.constant 0 : i32
    %c0_i32_1 = arith.constant 0 : i32
    return %c0_i32, %c0_i32_0 : i32, i32
  }
  func.func @transform_4(%arg0: i32) -> (i32, i32) {
    %c0_i32 = arith.constant 0 : i32
    %c0_i32_0 = arith.constant 0 : i32
    %c0_i32_1 = arith.constant 0 : i32
    return %c0_i32, %c0_i32_0 : i32, i32
  }
  func.func @transform_5(%arg0: i32) -> (i32, i32) {
    %c0_i32 = arith.constant 0 : i32
    %c0_i32_0 = arith.constant 0 : i32
    %c0_i32_1 = arith.constant 0 : i32
    return %c0_i32, %c0_i32_0 : i32, i32
  }
}

</mosaic_0001>

<bundles_post_ra>
// kernel: _forward.1
= control target key start
LH: loop header
LB: loop body
LE: loop exit
PB: predicated region body
PF: predicated region fallthrough
CT: control target
= control target key end

     0   :  { %10 = vsyncpa [#allocation4], 0  ;;  %s4571_s18 = smov 0   ;;  %s5667_s0 = inlined_call_operand.vmem [shape: bf16[2,1536], index: 0, kind: input, shape index: {}]   ;;  %s5668_s1 = inlined_call_operand.vmem [shape: bf16[1536,1029], index: 1, kind: input, shape index: {}]   ;;  %s5669_s2 = inlined_call_operand.vmem [shape: f32[1,1029], index: 2, kind: input, shape index: {}]   ;;  %s5670_s3 = inlined_call_operand.vmem [shape: f32[1029,2], index: 3, kind: input, shape index: {}]   ;;  %s5671_s4 = inlined_call_operand.vmem [shape: f32[1,2], index: 4, kind: input, shape index: {}]   ;;  %s5672_s5 = inlined_call_operand.hbm [shape: f32[2,2], index: 5, kind: output, shape index: {}]  }
   0x1 LB: > { %s4577_s19 = sadd.s32 4294967295, %s4537_s18   ;;  %p3015_p0 = scmp.ge.s32.totalorder %s4537_s18, 1  ;;  %s4537_s18 = sphi %s4571_s18, %s16_s18  }
   0x2   : > { %p195_p1 = scmp.lt.s32.totalorder %s4537_s18, 4 }
   0x4   : > { %p196_p2 = pnand %p3015_p0, %p195_p1 }
   0x5   : > { %s3016_s20 = sshll.u32 (!%p196_p2), %s4577_s19, 2  ;;  %s3017_s21 = sshll.u32 (!%p196_p2), %s4577_s19, 6 }
   0x6   : > { %199 = sbr.rel (%p196_p2) target bundleno = 693 (0x2b5), region = 40  ;;  %p224_p3 = scmp.lt.s32.totalorder (!%p196_p2), %s3016_s20, 11 }
   0x7   : > { %p229_p4 = scmp.lt.s32.totalorder (!%p196_p2), %s3017_s21, 191  ;;  %p3019_p5 = scmp.ne.s32.totalorder (!%p196_p2), %s4577_s19, 0 }
   0xb   : > { %s5674_s20 = smov (!%p224_p3, %s3016_s20), 11  ;;  %s5676_s21 = smov (!%p229_p4, %s3017_s21), 191 }
   0xc   : > { %s226_s24 = scalar_lea.vmem %s5667_s0, %s5674_s20  ;;  %s4468_s25 = smul.u32 36, %s5676_s21 }
   0xd   : > { %238 = sbr.rel (%p3019_p5) target bundleno = 22 (0x16), region = 44 }
   0xe   : > { %s4592_s28 = scalar_lea.vmem %s5668_s1, %s4468_s25 }
  0x12   : > { %vm241_vm0 = vcmask 33792   ;;  %v4539_v0 = vmov 0.0  }
  0x13   : > { %239 = vst [vmem:[#allocation2] sm:$0xff] %v4539_v0 }
  0x14   : > { %240 = vst [vmem:[#allocation2 + $0x8] sm:$0xff] %v4539_v0 }
  0x15   : > { %242 = vst.msk [vmem:[#allocation2 + $0x10] sm:$0x3] %vm241_vm0, %v4539_v0 }
  0x16 PF: > { %v3274_v1 = vld [vmem:[%s4592_s28 + $0x1f8] sm:$0xf]  ;;  %v4247_v2 = vld [vmem:[%s4592_s28 + $0x218] sm:$0xf0]  ;;  %v3238_v12 = vld [vmem:[%s4592_s28 + $0x1b0] sm:$0xf] }
  0x17   : > { %v3562_v3 = vld [vmem:[%s4592_s28 + $0x438] sm:$0xf]  ;;  %v3275_v4 = vor.u32 %v4247_v2, %v3274_v1  ;;  %v4319_v5 = vld [vmem:[%s4592_s28 + $0x458] sm:$0xf0]  ;;  %v4238_v14 = vld [vmem:[%s4592_s28 + $0x1d0] sm:$0xf0] }
  0x18   : > { %v3850_v6 = vld [vmem:[%s4592_s28 + $0x678] sm:$0xf]  ;;  %v4391_v7 = vld [vmem:[%s4592_s28 + $0x698] sm:$0xf0]  ;;  %v3563_v8 = vor.u32 %v4319_v5, %v3562_v3  ;;  %v3526_v15 = vld [vmem:[%s4592_s28 + $0x3f0] sm:$0xf]  ;;  %v3239_v17 = vor.u32 %v4238_v14, %v3238_v12 }
  0x19   : > { %v3851_v9 = vor.u32 %v4391_v7, %v3850_v6  ;;  %v4138_v10 = vld [vmem:[%s4592_s28 + $0x8b8] sm:$0xf]  ;;  %v4463_v11 = vld [vmem:[%s4592_s28 + $0x8d8] sm:$0xf0]  ;;  %2049 = vmatpush.bf16.msra.mxu0 %v3275_v4  ;;  %v4310_v16 = vld [vmem:[%s4592_s28 + $0x410] sm:$0xf0] }
  0x1a   : > { %v4139_v13 = vor.u32 %v4463_v11, %v4138_v10  ;;  %2062 = vmatpush.bf16.msra.mxu1 %v3563_v8  ;;  %v3527_v18 = vor.u32 %v4310_v16, %v3526_v15  ;;  %v3814_v19 = vld [vmem:[%s4592_s28 + $0x630] sm:$0xf]  ;;  %v4382_v20 = vld [vmem:[%s4592_s28 + $0x650] sm:$0xf0]  ;;  %v3202_v24 = vld [vmem:[%s4592_s28 + $0x168] sm:$0xf] }
  0x1b   : > { %2075 = vmatpush.bf16.msra.mxu2 %v3851_v9  ;;  %v4102_v21 = vld [vmem:[%s4592_s28 + $0x870] sm:$0xf]  ;;  %v3815_v22 = vor.u32 %v4382_v20, %v3814_v19  ;;  %v4454_v23 = vld [vmem:[%s4592_s28 + $0x890] sm:$0xf0]  ;;  %v4229_v25 = vld [vmem:[%s4592_s28 + $0x188] sm:$0xf0] }
  0x1c   : > { %2088 = vmatpush.bf16.msra.mxu3 %v4139_v13  ;;  %v4103_v26 = vor.u32 %v4454_v23, %v4102_v21  ;;  %v3490_v27 = vld [vmem:[%s4592_s28 + $0x3a8] sm:$0xf]  ;;  %v4301_v28 = vld [vmem:[%s4592_s28 + $0x3c8] sm:$0xf0]  ;;  %v3203_v30 = vor.u32 %v4229_v25, %v3202_v24  ;;  %v3166_v36 = vld [vmem:[%s4592_s28 + $0x120] sm:$0xf] }
  0x1d   : > { %v3778_v29 = vld [vmem:[%s4592_s28 + $0x5e8] sm:$0xf]  ;;  %2050 = vmatpush.bf16.msra.mxu0 %v3239_v17  ;;  %v4373_v31 = vld [vmem:[%s4592_s28 + $0x608] sm:$0xf0]  ;;  %v3491_v34 = vor.u32 %v4301_v28, %v3490_v27  ;;  %v4220_v37 = vld [vmem:[%s4592_s28 + $0x140] sm:$0xf0] }
  0x1e   : > { %v4066_v32 = vld [vmem:[%s4592_s28 + $0x828] sm:$0xf]  ;;  %v4445_v33 = vld [vmem:[%s4592_s28 + $0x848] sm:$0xf0]  ;;  %2063 = vmatpush.bf16.msra.mxu1 %v3527_v18  ;;  %v3779_v35 = vor.u32 %v4373_v31, %v3778_v29  ;;  %v3454_v38 = vld [vmem:[%s4592_s28 + $0x360] sm:$0xf]  ;;  %v3167_v45 = vor.u32 %v4220_v37, %v3166_v36 }
  0x1f   : > { %2076 = vmatpush.bf16.msra.mxu2 %v3815_v22  ;;  %v4067_v39 = vor.u32 %v4445_v33, %v4066_v32  ;;  %v4292_v40 = vld [vmem:[%s4592_s28 + $0x380] sm:$0xf0]  ;;  %v3742_v41 = vld [vmem:[%s4592_s28 + $0x5a0] sm:$0xf]  ;;  %v3130_v48 = vld [vmem:[%s4592_s28 + $0xd8] sm:$0xf] }
  0x20   : > { %2089 = vmatpush.bf16.msra.mxu3 %v4103_v26  ;;  %v4364_v42 = vld [vmem:[%s4592_s28 + $0x5c0] sm:$0xf0]  ;;  %v4030_v43 = vld [vmem:[%s4592_s28 + $0x7e0] sm:$0xf]  ;;  %v3455_v46 = vor.u32 %v4292_v40, %v3454_v38  ;;  %v4211_v49 = vld [vmem:[%s4592_s28 + $0xf8] sm:$0xf0] }
  0x21   : > { %v4436_v44 = vld [vmem:[%s4592_s28 + $0x800] sm:$0xf0]  ;;  %2051 = vmatpush.bf16.msra.mxu0 %v3203_v30  ;;  %v3743_v47 = vor.u32 %v4364_v42, %v3742_v41  ;;  %v3418_v50 = vld [vmem:[%s4592_s28 + $0x318] sm:$0xf]  ;;  %v4283_v52 = vld [vmem:[%s4592_s28 + $0x338] sm:$0xf0]  ;;  %v3131_v57 = vor.u32 %v4211_v49, %v3130_v48 }
  0x22   : > { %2064 = vmatpush.bf16.msra.mxu1 %v3491_v34  ;;  %v4031_v51 = vor.u32 %v4436_v44, %v4030_v43  ;;  %v3706_v53 = vld [vmem:[%s4592_s28 + $0x558] sm:$0xf]  ;;  %v4355_v54 = vld [vmem:[%s4592_s28 + $0x578] sm:$0xf0]  ;;  %v3419_v58 = vor.u32 %v4283_v52, %v3418_v50  ;;  %v3094_v60 = vld [vmem:[%s4592_s28 + $0x90] sm:$0xf] }
  0x23   : > { %2077 = vmatpush.bf16.msra.mxu2 %v3779_v35  ;;  %v3994_v55 = vld [vmem:[%s4592_s28 + $0x798] sm:$0xf]  ;;  %v4427_v56 = vld [vmem:[%s4592_s28 + $0x7b8] sm:$0xf0]  ;;  %v3707_v59 = vor.u32 %v4355_v54, %v3706_v53  ;;  %v4202_v61 = vld [vmem:[%s4592_s28 + $0xb0] sm:$0xf0] }
  0x24   : > { %2090 = vmatpush.bf16.msra.mxu3 %v4067_v39  ;;  %v3382_v62 = vld [vmem:[%s4592_s28 + $0x2d0] sm:$0xf]  ;;  %v3995_v63 = vor.u32 %v4427_v56, %v3994_v55  ;;  %v4274_v0 = vld [vmem:[%s4592_s28 + $0x2f0] sm:$0xf0]  ;;  %v3095_v5 = vor.u32 %v4202_v61, %v3094_v60  ;;  %v3058_v8 = vld [vmem:[%s4592_s28 + $0x48] sm:$0xf] }
  0x25   : > { %2052 = vmatpush.bf16.msra.mxu0 %v3167_v45  ;;  %v3670_v1 = vld [vmem:[%s4592_s28 + $0x510] sm:$0xf]  ;;  %v4346_v2 = vld [vmem:[%s4592_s28 + $0x530] sm:$0xf0]  ;;  %v3383_v6 = vor.u32 %v4274_v0, %v3382_v62  ;;  %v4193_v9 = vld [vmem:[%s4592_s28 + $0x68] sm:$0xf0] }
  0x26   : > { %2065 = vmatpush.bf16.msra.mxu1 %v3455_v46  ;;  %v3958_v3 = vld [vmem:[%s4592_s28 + $0x750] sm:$0xf]  ;;  %v4418_v4 = vld [vmem:[%s4592_s28 + $0x770] sm:$0xf0]  ;;  %v3671_v7 = vor.u32 %v4346_v2, %v3670_v1  ;;  %v3346_v10 = vld [vmem:[%s4592_s28 + $0x288] sm:$0xf]  ;;  %v3059_v17 = vor.u32 %v4193_v9, %v3058_v8 }
  0x27   : > { %2078 = vmatpush.bf16.msra.mxu2 %v3743_v47  ;;  %v3959_v11 = vor.u32 %v4418_v4, %v3958_v3  ;;  %v4265_v12 = vld [vmem:[%s4592_s28 + $0x2a8] sm:$0xf0]  ;;  %v3634_v13 = vld [vmem:[%s4592_s28 + $0x4c8] sm:$0xf]  ;;  %v3022_v18 = vld [vmem:[%s4592_s28] sm:$0xf] }
  0x28   : > { %2091 = vmatpush.bf16.msra.mxu3 %v4031_v51  ;;  %v4337_v14 = vld [vmem:[%s4592_s28 + $0x4e8] sm:$0xf0]  ;;  %v3922_v15 = vld [vmem:[%s4592_s28 + $0x708] sm:$0xf]  ;;  %v4184_v19 = vld [vmem:[%s4592_s28 + $0x20] sm:$0xf0]  ;;  %v3347_v20 = vor.u32 %v4265_v12, %v3346_v10 }
  0x29   : > { %2053 = vmatpush.bf16.msra.mxu0 %v3131_v57  ;;  %v4409_v16 = vld [vmem:[%s4592_s28 + $0x728] sm:$0xf0]  ;;  %v3635_v21 = vor.u32 %v4337_v14, %v3634_v13  ;;  %v3310_v22 = vld [vmem:[%s4592_s28 + $0x240] sm:$0xf]  ;;  %v4256_v23 = vld [vmem:[%s4592_s28 + $0x260] sm:$0xf0]  ;;  %v3023_v32 = vor.u32 %v4184_v19, %v3022_v18 }
  0x2a   : > { %2066 = vmatpush.bf16.msra.mxu1 %v3419_v58  ;;  %v3598_v24 = vld [vmem:[%s4592_s28 + $0x480] sm:$0xf]  ;;  %v3923_v25 = vor.u32 %v4409_v16, %v3922_v15  ;;  %v4328_v26 = vld [vmem:[%s4592_s28 + $0x4a0] sm:$0xf0]  ;;  %v4243_v29 = vld [vmem:[%s4592_s28 + $0x1fc] sm:$0xf]  ;;  %v3311_v36 = vor.u32 %v4256_v23, %v3310_v22 }
  0x2b   : > { %2079 = vmatpush.bf16.msra.mxu2 %v3707_v59  ;;  %v3886_v27 = vld [vmem:[%s4592_s28 + $0x6c0] sm:$0xf]  ;;  %v4400_v28 = vld [vmem:[%s4592_s28 + $0x6e0] sm:$0xf0]  ;;  %v4315_v31 = vld [vmem:[%s4592_s28 + $0x43c] sm:$0xf]  ;;  %v3599_v37 = vor.u32 %v4328_v26, %v3598_v24 }
  0x2c   : > { %2092 = vmatpush.bf16.msra.mxu3 %v3995_v63  ;;  %v3276_v30 = vld [vmem:[%s4592_s28 + $0x21c] sm:$0xf0]  ;;  %v4387_v34 = vld [vmem:[%s4592_s28 + $0x67c] sm:$0xf]  ;;  %v3887_v40 = vor.u32 %v4400_v28, %v3886_v27  ;;  %v4234_v44 = vld [vmem:[%s4592_s28 + $0x1b4] sm:$0xf] }
  0x2d   : > { %2054 = vmatpush.bf16.msra.mxu0 %v3095_v5  ;;  %v3564_v33 = vld [vmem:[%s4592_s28 + $0x45c] sm:$0xf0]  ;;  %v4459_v38 = vld [vmem:[%s4592_s28 + $0x8bc] sm:$0xf]  ;;  %v3279_v41 = vor.u32 %v4243_v29, %v3276_v30  ;;  %v3240_v45 = vld [vmem:[%s4592_s28 + $0x1d4] sm:$0xf0] }
  0x2e   : > { %2067 = vmatpush.bf16.msra.mxu1 %v3383_v6  ;;  %v3852_v35 = vld [vmem:[%s4592_s28 + $0x69c] sm:$0xf0]  ;;  %v3567_v42 = vor.u32 %v4315_v31, %v3564_v33  ;;  %v4306_v46 = vld [vmem:[%s4592_s28 + $0x3f4] sm:$0xf]  ;;  %v3528_v48 = vld [vmem:[%s4592_s28 + $0x414] sm:$0xf0]  ;;  %v3243_v54 = vor.u32 %v4234_v44, %v3240_v45 }
  0x2f   : > { %2080 = vmatpush.bf16.msra.mxu2 %v3671_v7  ;;  %v4140_v39 = vld [vmem:[%s4592_s28 + $0x8dc] sm:$0xf0]  ;;  %v3855_v43 = vor.u32 %v4387_v34, %v3852_v35  ;;  %v4378_v49 = vld [vmem:[%s4592_s28 + $0x634] sm:$0xf]  ;;  %v3816_v50 = vld [vmem:[%s4592_s28 + $0x654] sm:$0xf0]  ;;  %v3531_v55 = vor.u32 %v4306_v46, %v3528_v48 }
  0x30   : > { %2093 = vmatpush.bf16.msra.mxu3 %v3959_v11  ;;  %v4143_v47 = vor.u32 %v4459_v38, %v4140_v39  ;;  %v4450_v51 = vld [vmem:[%s4592_s28 + $0x874] sm:$0xf]  ;;  %v4104_v52 = vld [vmem:[%s4592_s28 + $0x894] sm:$0xf0]  ;;  %v246_v53 = vld [vmem:[%s226_s24] sm:$0xf]  ;;  %v3819_v56 = vor.u32 %v4378_v49, %v3816_v50 }
  0x31   : > { %2055 = vmatpush.bf16.msra.mxu0 %v3059_v17  ;;  %568 = vst [vmem:[#allocation1] ss:$9 sm:$0xff] %v246_v53  ;;  %v4225_v57 = vld [vmem:[%s4592_s28 + $0x16c] sm:$0xf]  ;;  %v3204_v58 = vld [vmem:[%s4592_s28 + $0x18c] sm:$0xf0]  ;;  %v4107_v60 = vor.u32 %v4450_v51, %v4104_v52 }
  0x32   : > { %2068 = vmatpush.bf16.msra.mxu1 %v3347_v20  ;;  %v4297_v59 = vld [vmem:[%s4592_s28 + $0x3ac] sm:$0xf]  ;;  %v3492_v61 = vld [vmem:[%s4592_s28 + $0x3cc] sm:$0xf0]  ;;  %v3207_v2 = vor.u32 %v4225_v57, %v3204_v58  ;;  %v4216_v3 = vld [vmem:[%s4592_s28 + $0x124] sm:$0xf] }
  0x33   : > { %2081 = vmatpush.bf16.msra.mxu2 %v3635_v21  ;;  %v4369_v62 = vld [vmem:[%s4592_s28 + $0x5ec] sm:$0xf]  ;;  %v3780_v63 = vld [vmem:[%s4592_s28 + $0x60c] sm:$0xf0]  ;;  %v3495_v4 = vor.u32 %v4297_v59, %v3492_v61  ;;  %v3168_v6 = vld [vmem:[%s4592_s28 + $0x144] sm:$0xf0] }
  0x34   : > { %2094 = vmatpush.bf16.msra.mxu3 %v3923_v25  ;;  %v4441_v0 = vld [vmem:[%s4592_s28 + $0x82c] sm:$0xf]  ;;  %v4068_v1 = vld [vmem:[%s4592_s28 + $0x84c] sm:$0xf0]  ;;  %v3783_v5 = vor.u32 %v4369_v62, %v3780_v63  ;;  %v4288_v7 = vld [vmem:[%s4592_s28 + $0x364] sm:$0xf]  ;;  %v3171_v16 = vor.u32 %v4216_v3, %v3168_v6 }
  0x35   : > { %2056 = vmatpush.bf16.msra.mxu0 %v3023_v32  ;;  %v3456_v8 = vld [vmem:[%s4592_s28 + $0x384] sm:$0xf0]  ;;  %v4071_v9 = vor.u32 %v4441_v0, %v4068_v1  ;;  %v4360_v10 = vld [vmem:[%s4592_s28 + $0x5a4] sm:$0xf]  ;;  %v4207_v21 = vld [vmem:[%s4592_s28 + $0xdc] sm:$0xf] }
  0x36   : > { %2069 = vmatpush.bf16.msra.mxu1 %v3311_v36  ;;  %v3744_v11 = vld [vmem:[%s4592_s28 + $0x5c4] sm:$0xf0]  ;;  %v4432_v12 = vld [vmem:[%s4592_s28 + $0x7e4] sm:$0xf]  ;;  %v3459_v19 = vor.u32 %v4288_v7, %v3456_v8  ;;  %v3132_v22 = vld [vmem:[%s4592_s28 + $0xfc] sm:$0xf0] }
  0x37   : > { %2082 = vmatpush.bf16.msra.mxu2 %v3599_v37  ;;  %v4032_v13 = vld [vmem:[%s4592_s28 + $0x804] sm:$0xf0]  ;;  %v3747_v20 = vor.u32 %v4360_v10, %v3744_v11  ;;  %v4279_v23 = vld [vmem:[%s4592_s28 + $0x31c] sm:$0xf]  ;;  %v3420_v25 = vld [vmem:[%s4592_s28 + $0x33c] sm:$0xf0]  ;;  %v3135_v30 = vor.u32 %v4207_v21, %v3132_v22 }
  0x38   : > { %2095 = vmatpush.bf16.msra.mxu3 %v3887_v40  ;;  %v4696_v14 = vld [vmem:[#allocation1 + $0x12] sm:$0xff]  ;;  %v4698_v15 = vld [vmem:[#allocation1] sm:$0xff]  ;;  %v4703_v18 = vld [vmem:[#allocation1 + $0x9] sm:$0xff]  ;;  %v4035_v24 = vor.u32 %v4432_v12, %v4032_v13  ;;  %v3423_v31 = vor.u32 %v4279_v23, %v3420_v25  ;;  %vm2531_vm1 = vcmask 1041408   ;;  %vm2533_vm2 = vcmask 1045508   ;;  %p4172_p6 = scmp.ne.s32.totalorder %s4577_s19, 2 }
  0x39   : > { %2101 = vmatpush.bf16.msrb.mxu0 %v3279_v41  ;;  %v4701_v17 = vld [vmem:[#allocation1 + $0x1b] sm:$0xff]  ;;  %2070 = vmatmul.bf16.vlgmr.msra.gmra.mxu1 %v4703_v18  ;;  %v4198_v33 = vld [vmem:[%s4592_s28 + $0x94] sm:$0xf]  ;;  %v4189_v45 = vld [vmem:[%s4592_s28 + $0x4c] sm:$0xf]  ;;  %vm2535_vm3 = vcmask 1043456  }
  0x3a   : > { %2114 = vmatpush.bf16.msrb.mxu1 %v3567_v42  ;;  %2083 = vmatmul.bf16.vlgmr.msra.gmra.mxu2 %v4696_v14  ;;  %v4351_v26 = vld [vmem:[%s4592_s28 + $0x55c] sm:$0xf]  ;;  %v3708_v27 = vld [vmem:[%s4592_s28 + $0x57c] sm:$0xf0]  ;;  %v3096_v34 = vld [vmem:[%s4592_s28 + $0xb4] sm:$0xf0] }
  0x3b   : > { %2127 = vmatpush.bf16.msrb.mxu2 %v3855_v43  ;;  %2057 = vmatmul.bf16.vlgmr.msra.gmra.mxu0 %v4698_v15  ;;  %v4423_v28 = vld [vmem:[%s4592_s28 + $0x79c] sm:$0xf]  ;;  %v3996_v29 = vld [vmem:[%s4592_s28 + $0x7bc] sm:$0xf0]  ;;  %v3711_v32 = vor.u32 %v4351_v26, %v3708_v27  ;;  %v4270_v35 = vld [vmem:[%s4592_s28 + $0x2d4] sm:$0xf]  ;;  %v3099_v42 = vor.u32 %v4198_v33, %v3096_v34 }
  0x3c   : > { %2140 = vmatpush.bf16.msrb.mxu3 %v4143_v47  ;;  %v3999_v36 = vor.u32 %v4423_v28, %v3996_v29  ;;  %v3384_v37 = vld [vmem:[%s4592_s28 + $0x2f4] sm:$0xf0]  ;;  %v4342_v38 = vld [vmem:[%s4592_s28 + $0x514] sm:$0xf]  ;;  %v3060_v46 = vld [vmem:[%s4592_s28 + $0x6c] sm:$0xf0] }
  0x3d   : > { %2102 = vmatpush.bf16.msrb.mxu0 %v3243_v54  ;;  %2096 = vmatmul.bf16.vlgmr.msra.gmra.mxu3 %v4701_v17  ;;  %v3672_v39 = vld [vmem:[%s4592_s28 + $0x534] sm:$0xf0]  ;;  %v4414_v40 = vld [vmem:[%s4592_s28 + $0x754] sm:$0xf]  ;;  %v3387_v43 = vor.u32 %v4270_v35, %v3384_v37  ;;  %v4261_v47 = vld [vmem:[%s4592_s28 + $0x28c] sm:$0xf]  ;;  %v3063_v54 = vor.u32 %v4189_v45, %v3060_v46 }
  0x3e   : > { %2115 = vmatpush.bf16.msrb.mxu1 %v3531_v55  ;;  %v3960_v41 = vld [vmem:[%s4592_s28 + $0x774] sm:$0xf0]  ;;  %v3675_v44 = vor.u32 %v4342_v38, %v3672_v39  ;;  %v3348_v49 = vld [vmem:[%s4592_s28 + $0x2ac] sm:$0xf0]  ;;  %v4333_v50 = vld [vmem:[%s4592_s28 + $0x4cc] sm:$0xf] }
  0x3f   : > { %2128 = vmatpush.bf16.msrb.mxu2 %v3819_v56  ;;  %v3963_v48 = vor.u32 %v4414_v40, %v3960_v41  ;;  %v3636_v51 = vld [vmem:[%s4592_s28 + $0x4ec] sm:$0xf0]  ;;  %v4405_v52 = vld [vmem:[%s4592_s28 + $0x70c] sm:$0xf]  ;;  %v4180_v55 = vld [vmem:[%s4592_s28 + $0x4] sm:$0xf]  ;;  %v3351_v57 = vor.u32 %v4261_v47, %v3348_v49 }
  0x40   : > { %2141 = vmatpush.bf16.msrb.mxu3 %v4107_v60  ;;  %v3924_v53 = vld [vmem:[%s4592_s28 + $0x72c] sm:$0xf0]  ;;  %v3024_v56 = vld [vmem:[%s4592_s28 + $0x24] sm:$0xf0]  ;;  %v3639_v58 = vor.u32 %v4333_v50, %v3636_v51  ;;  %v4252_v59 = vld [vmem:[%s4592_s28 + $0x244] sm:$0xf] }
  0x41   : > { %2103 = vmatpush.bf16.msrb.mxu0 %v3207_v2  ;;  %v3312_v60 = vld [vmem:[%s4592_s28 + $0x264] sm:$0xf0]  ;;  %v4324_v61 = vld [vmem:[%s4592_s28 + $0x484] sm:$0xf]  ;;  %v3927_v62 = vor.u32 %v4405_v52, %v3924_v53  ;;  %v3282_v2 = vld [vmem:[%s4592_s28 + $0x200] sm:$0xf] }
  0x42   : > { %2116 = vmatpush.bf16.msrb.mxu1 %v3495_v4  ;;  %v3600_v63 = vld [vmem:[%s4592_s28 + $0x4a4] sm:$0xf0]  ;;  %v4396_v0 = vld [vmem:[%s4592_s28 + $0x6c4] sm:$0xf]  ;;  %v3570_v4 = vld [vmem:[%s4592_s28 + $0x440] sm:$0xf] }
  0x43   : > { %2129 = vmatpush.bf16.msrb.mxu2 %v3783_v5  ;;  %v3888_v1 = vld [vmem:[%s4592_s28 + $0x6e4] sm:$0xf0]  ;;  %v4248_v3 = vld [vmem:[%s4592_s28 + $0x220] sm:$0xf0]  ;;  %v3027_v5 = vor.u32 %v4180_v55, %v3024_v56  ;;  %v3858_v7 = vld [vmem:[%s4592_s28 + $0x680] sm:$0xf]  ;;  %v3603_v10 = vor.u32 %v4324_v61, %v3600_v63 }
  0x44   : > { %2142 = vmatpush.bf16.msrb.mxu3 %v4071_v9  ;;  %v4320_v6 = vld [vmem:[%s4592_s28 + $0x460] sm:$0xf0]  ;;  %v3315_v9 = vor.u32 %v4252_v59, %v3312_v60  ;;  %v4146_v11 = vld [vmem:[%s4592_s28 + $0x8c0] sm:$0xf]  ;;  %v3891_v13 = vor.u32 %v4396_v0, %v3888_v1  ;;  %v3246_v21 = vld [vmem:[%s4592_s28 + $0x1b8] sm:$0xf] }
  0x45   : > { %2104 = vmatpush.bf16.msrb.mxu0 %v3171_v16  ;;  %v4392_v8 = vld [vmem:[%s4592_s28 + $0x6a0] sm:$0xf0]  ;;  %v3283_v16 = vor.u32 %v4248_v3, %v3282_v2  ;;  %v4239_v22 = vld [vmem:[%s4592_s28 + $0x1d8] sm:$0xf0]  ;;  %v3534_v23 = vld [vmem:[%s4592_s28 + $0x3f8] sm:$0xf] }
  0x46   : > { %2117 = vmatpush.bf16.msrb.mxu1 %v3459_v19  ;;  %v4464_v12 = vld [vmem:[%s4592_s28 + $0x8e0] sm:$0xf0]  ;;  %v3571_v19 = vor.u32 %v4320_v6, %v3570_v4  ;;  %v4311_v25 = vld [vmem:[%s4592_s28 + $0x418] sm:$0xf0]  ;;  %v3822_v26 = vld [vmem:[%s4592_s28 + $0x638] sm:$0xf] }
  0x47   : > { %2130 = vmatpush.bf16.msrb.mxu2 %v3747_v20  ;;  %v3859_v20 = vor.u32 %v4392_v8, %v3858_v7  ;;  %v4383_v27 = vld [vmem:[%s4592_s28 + $0x658] sm:$0xf0]  ;;  %v4110_v28 = vld [vmem:[%s4592_s28 + $0x878] sm:$0xf]  ;;  %v3210_v33 = vld [vmem:[%s4592_s28 + $0x170] sm:$0xf] }
  0x48   : > { %2143 = vmatpush.bf16.msrb.mxu3 %v4035_v24  ;;  %v4147_v24 = vor.u32 %v4464_v12, %v4146_v11  ;;  %v4455_v29 = vld [vmem:[%s4592_s28 + $0x898] sm:$0xf0]  ;;  %v4230_v34 = vld [vmem:[%s4592_s28 + $0x190] sm:$0xf0]  ;;  %v3498_v35 = vld [vmem:[%s4592_s28 + $0x3b0] sm:$0xf] }
  0x49   : > { %2105 = vmatpush.bf16.msrb.mxu0 %v3135_v30  ;;  %v3247_v30 = vor.u32 %v4239_v22, %v3246_v21  ;;  %v4302_v37 = vld [vmem:[%s4592_s28 + $0x3d0] sm:$0xf0]  ;;  %v3786_v38 = vld [vmem:[%s4592_s28 + $0x5f0] sm:$0xf]  ;;  %v3174_v45 = vld [vmem:[%s4592_s28 + $0x128] sm:$0xf] }
  0x4a   : > { %2118 = vmatpush.bf16.msrb.mxu1 %v3423_v31  ;;  %v3535_v31 = vor.u32 %v4311_v25, %v3534_v23  ;;  %v4374_v39 = vld [vmem:[%s4592_s28 + $0x610] sm:$0xf0]  ;;  %v4074_v40 = vld [vmem:[%s4592_s28 + $0x830] sm:$0xf]  ;;  %v4221_v46 = vld [vmem:[%s4592_s28 + $0x148] sm:$0xf0] }
  0x4b   : > { %2131 = vmatpush.bf16.msrb.mxu2 %v3711_v32  ;;  %v3823_v32 = vor.u32 %v4383_v27, %v3822_v26  ;;  %v4446_v41 = vld [vmem:[%s4592_s28 + $0x850] sm:$0xf0]  ;;  %v3462_v47 = vld [vmem:[%s4592_s28 + $0x368] sm:$0xf]  ;;  %v4293_v49 = vld [vmem:[%s4592_s28 + $0x388] sm:$0xf0] }
  0x4c   : > { %2144 = vmatpush.bf16.msrb.mxu3 %v3999_v36  ;;  %v4111_v36 = vor.u32 %v4455_v29, %v4110_v28  ;;  %v3750_v50 = vld [vmem:[%s4592_s28 + $0x5a8] sm:$0xf]  ;;  %v4365_v51 = vld [vmem:[%s4592_s28 + $0x5c8] sm:$0xf0]  ;;  %v3463_v55 = vor.u32 %v4293_v49, %v3462_v47  ;;  %v3426_v59 = vld [vmem:[%s4592_s28 + $0x320] sm:$0xf] }
  0x4d   : > { %2106 = vmatpush.bf16.msrb.mxu0 %v3099_v42  ;;  %v3211_v42 = vor.u32 %v4230_v34, %v3210_v33  ;;  %v4038_v52 = vld [vmem:[%s4592_s28 + $0x7e8] sm:$0xf]  ;;  %v4437_v53 = vld [vmem:[%s4592_s28 + $0x808] sm:$0xf0]  ;;  %v3751_v56 = vor.u32 %v4365_v51, %v3750_v50  ;;  %v4284_v61 = vld [vmem:[%s4592_s28 + $0x340] sm:$0xf0] }
  0x4e   : > { %2119 = vmatpush.bf16.msrb.mxu1 %v3387_v43  ;;  %v3499_v43 = vor.u32 %v4302_v37, %v3498_v35  ;;  %v4039_v60 = vor.u32 %v4437_v53, %v4038_v52  ;;  %v4356_v63 = vld [vmem:[%s4592_s28 + $0x580] sm:$0xf0]  ;;  %v4002_v0 = vld [vmem:[%s4592_s28 + $0x7a0] sm:$0xf]  ;;  %v3427_v3 = vor.u32 %v4284_v61, %v3426_v59  ;;  %v4203_v6 = vld [vmem:[%s4592_s28 + $0xb8] sm:$0xf0] }
  0x4f   : > { %2132 = vmatpush.bf16.msrb.mxu2 %v3675_v44  ;;  %v3787_v44 = vor.u32 %v4374_v39, %v3786_v38  ;;  %v4428_v1 = vld [vmem:[%s4592_s28 + $0x7c0] sm:$0xf0]  ;;  %v3390_v7 = vld [vmem:[%s4592_s28 + $0x2d8] sm:$0xf]  ;;  %v4347_v11 = vld [vmem:[%s4592_s28 + $0x538] sm:$0xf0] }
  0x50   : > { %2145 = vmatpush.bf16.msrb.mxu3 %v3963_v48  ;;  %v4075_v48 = vor.u32 %v4446_v41, %v4074_v40  ;;  %v4003_v8 = vor.u32 %v4428_v1, %v4002_v0  ;;  %v3966_v12 = vld [vmem:[%s4592_s28 + $0x758] sm:$0xf]  ;;  %v3066_v21 = vld [vmem:[%s4592_s28 + $0x50] sm:$0xf]  ;;  %v4194_v22 = vld [vmem:[%s4592_s28 + $0x70] sm:$0xf0] }
  0x51   : > { %2107 = vmatpush.bf16.msrb.mxu0 %v3063_v54  ;;  %v3175_v54 = vor.u32 %v4221_v46, %v3174_v45  ;;  %v3354_v23 = vld [vmem:[%s4592_s28 + $0x290] sm:$0xf]  ;;  %v4266_v25 = vld [vmem:[%s4592_s28 + $0x2b0] sm:$0xf0]  ;;  %v3318_v35 = vld [vmem:[%s4592_s28 + $0x248] sm:$0xf] }
  0x52   : > { %2120 = vmatpush.bf16.msrb.mxu1 %v3351_v57  ;;  %v3138_v57 = vld [vmem:[%s4592_s28 + $0xe0] sm:$0xf]  ;;  %v3642_v26 = vld [vmem:[%s4592_s28 + $0x4d0] sm:$0xf]  ;;  %v4338_v27 = vld [vmem:[%s4592_s28 + $0x4f0] sm:$0xf0]  ;;  %v3355_v33 = vor.u32 %v4266_v25, %v3354_v23 }
  0x53   : > { %2133 = vmatpush.bf16.msrb.mxu2 %v3639_v58  ;;  %v4212_v58 = vld [vmem:[%s4592_s28 + $0x100] sm:$0xf0]  ;;  %v3930_v28 = vld [vmem:[%s4592_s28 + $0x710] sm:$0xf]  ;;  %v4410_v29 = vld [vmem:[%s4592_s28 + $0x730] sm:$0xf0]  ;;  %v3643_v34 = vor.u32 %v4338_v27, %v3642_v26 }
  0x54   : > { %2146 = vmatpush.bf16.msrb.mxu3 %v3927_v62  ;;  %v3714_v62 = vld [vmem:[%s4592_s28 + $0x560] sm:$0xf]  ;;  %v3139_v2 = vor.u32 %v4212_v58, %v3138_v57  ;;  %v3606_v37 = vld [vmem:[%s4592_s28 + $0x488] sm:$0xf]  ;;  %v3931_v38 = vor.u32 %v4410_v29, %v3930_v28  ;;  %v4329_v39 = vld [vmem:[%s4592_s28 + $0x4a8] sm:$0xf0] }
  0x55   : > { %2108 = vmatpush.bf16.msrb.mxu0 %v3027_v5  ;;  %v3715_v4 = vor.u32 %v4356_v63, %v3714_v62  ;;  %v3102_v5 = vld [vmem:[%s4592_s28 + $0x98] sm:$0xf]  ;;  %v3894_v40 = vld [vmem:[%s4592_s28 + $0x6c8] sm:$0xf]  ;;  %v4401_v41 = vld [vmem:[%s4592_s28 + $0x6e8] sm:$0xf0]  ;;  %v3607_v50 = vor.u32 %v4329_v39, %v3606_v37 }
  0x56   : > { %2121 = vmatpush.bf16.msrb.mxu1 %v3315_v9  ;;  %v4275_v9 = vld [vmem:[%s4592_s28 + $0x2f8] sm:$0xf0]  ;;  %v3572_v46 = vld [vmem:[%s4592_s28 + $0x464] sm:$0xf0]  ;;  %v4388_v47 = vld [vmem:[%s4592_s28 + $0x684] sm:$0xf]  ;;  %v3895_v53 = vor.u32 %v4401_v41, %v3894_v40 }
  0x57   : > { %2134 = vmatpush.bf16.msrb.mxu2 %v3603_v10  ;;  %v3678_v10 = vld [vmem:[%s4592_s28 + $0x518] sm:$0xf]  ;;  %v4460_v51 = vld [vmem:[%s4592_s28 + $0x8c4] sm:$0xf]  ;;  %v4148_v52 = vld [vmem:[%s4592_s28 + $0x8e4] sm:$0xf0] }
  0x58   : > { %2147 = vmatpush.bf16.msrb.mxu3 %v3891_v13  ;;  %2109 = vmatmul.bf16.vlgmr.msrb.gmra.mxu0 %v4698_v15  ;;  %v4419_v13 = vld [vmem:[%s4592_s28 + $0x778] sm:$0xf0]  ;;  %v3248_v58 = vld [vmem:[%s4592_s28 + $0x1dc] sm:$0xf0]  ;;  %v4289_v23 = vld [vmem:[%s4592_s28 + $0x36c] sm:$0xf] }
  0x59   : > { %2153 = vmatpush.bf16.msra.mxu0 %v3283_v16  ;;  %2122 = vmatmul.bf16.vlgmr.msrb.gmra.mxu1 %v4703_v18  ;;  %v3103_v16 = vor.u32 %v4203_v6, %v3102_v5  ;;  %v4235_v57 = vld [vmem:[%s4592_s28 + $0x1bc] sm:$0xf]  ;;  %v3536_v61 = vld [vmem:[%s4592_s28 + $0x41c] sm:$0xf0]  ;;  %v4226_v5 = vld [vmem:[%s4592_s28 + $0x174] sm:$0xf] }
  0x5a   : > { %2166 = vmatpush.bf16.msra.mxu1 %v3571_v19  ;;  %2135 = vmatmul.bf16.vlgmr.msrb.gmra.mxu2 %v4696_v14  ;;  %v3391_v19 = vor.u32 %v4275_v9, %v3390_v7  ;;  %v4307_v59 = vld [vmem:[%s4592_s28 + $0x3fc] sm:$0xf]  ;;  %v3824_v63 = vld [vmem:[%s4592_s28 + $0x65c] sm:$0xf0]  ;;  %v3212_v6 = vld [vmem:[%s4592_s28 + $0x194] sm:$0xf0] }
  0x5b   : > { %2179 = vmatpush.bf16.msra.mxu2 %v3859_v20  ;;  %2148 = vmatmul.bf16.vlgmr.msrb.gmra.mxu3 %v4701_v17  ;;  %v3679_v20 = vor.u32 %v4347_v11, %v3678_v10  ;;  %v4379_v62 = vld [vmem:[%s4592_s28 + $0x63c] sm:$0xf]  ;;  %v4112_v1 = vld [vmem:[%s4592_s28 + $0x89c] sm:$0xf0]  ;;  %v4298_v7 = vld [vmem:[%s4592_s28 + $0x3b4] sm:$0xf] }
  0x5c   : > { %2192 = vmatpush.bf16.msra.mxu3 %v4147_v24  ;;  %v3967_v24 = vor.u32 %v4419_v13, %v3966_v12  ;;  %v4451_v0 = vld [vmem:[%s4592_s28 + $0x87c] sm:$0xf]  ;;  %v3500_v9 = vld [vmem:[%s4592_s28 + $0x3d4] sm:$0xf0]  ;;  %v4370_v10 = vld [vmem:[%s4592_s28 + $0x5f4] sm:$0xf] }
  0x5d   : > { %2154 = vmatpush.bf16.msra.mxu0 %v3247_v30  ;;  %v3067_v30 = vor.u32 %v4194_v22, %v3066_v21  ;;  %v3788_v11 = vld [vmem:[%s4592_s28 + $0x614] sm:$0xf0]  ;;  %v4442_v12 = vld [vmem:[%s4592_s28 + $0x834] sm:$0xf]  ;;  %v4217_v21 = vld [vmem:[%s4592_s28 + $0x12c] sm:$0xf] }
  0x5e   : > { %2167 = vmatpush.bf16.msra.mxu1 %v3535_v31  ;;  %v3030_v31 = vld [vmem:[%s4592_s28 + $0x8] sm:$0xf]  ;;  %v4076_v13 = vld [vmem:[%s4592_s28 + $0x854] sm:$0xf0]  ;;  %v3176_v22 = vld [vmem:[%s4592_s28 + $0x14c] sm:$0xf0] }
  0x5f   : > { %2180 = vmatpush.bf16.msra.mxu2 %v3823_v32  ;;  %v4185_v32 = vld [vmem:[%s4592_s28 + $0x28] sm:$0xf0]  ;;  %v3464_v25 = vld [vmem:[%s4592_s28 + $0x38c] sm:$0xf0]  ;;  %v3428_v37 = vld [vmem:[%s4592_s28 + $0x344] sm:$0xf0] }
  0x60   : > { %2193 = vmatpush.bf16.msra.mxu3 %v4111_v36  ;;  %v4257_v36 = vld [vmem:[%s4592_s28 + $0x268] sm:$0xf0]  ;;  %v3031_v45 = vor.u32 %v4185_v32, %v3030_v31  ;;  %v3752_v27 = vld [vmem:[%s4592_s28 + $0x5cc] sm:$0xf0]  ;;  %v3467_v31 = vor.u32 %v4289_v23, %v3464_v25  ;;  %v3716_v39 = vld [vmem:[%s4592_s28 + $0x584] sm:$0xf0] }
  0x61   : > { %2155 = vmatpush.bf16.msra.mxu0 %v3211_v42  ;;  %v4244_v42 = vld [vmem:[%s4592_s28 + $0x204] sm:$0xf]  ;;  %v3319_v49 = vor.u32 %v4257_v36, %v3318_v35  ;;  %v4361_v26 = vld [vmem:[%s4592_s28 + $0x5ac] sm:$0xf]  ;;  %v4040_v29 = vld [vmem:[%s4592_s28 + $0x80c] sm:$0xf0] }
  0x62   : > { %2168 = vmatpush.bf16.msra.mxu1 %v3499_v43  ;;  %v3284_v43 = vld [vmem:[%s4592_s28 + $0x224] sm:$0xf0]  ;;  %v4433_v28 = vld [vmem:[%s4592_s28 + $0x7ec] sm:$0xf]  ;;  %v3755_v32 = vor.u32 %v4361_v26, %v3752_v27  ;;  %v4280_v35 = vld [vmem:[%s4592_s28 + $0x324] sm:$0xf] }
  0x63   : > { %2181 = vmatpush.bf16.msra.mxu2 %v3787_v44  ;;  %v4316_v44 = vld [vmem:[%s4592_s28 + $0x444] sm:$0xf]  ;;  %v4043_v36 = vor.u32 %v4433_v28, %v4040_v29  ;;  %v4004_v41 = vld [vmem:[%s4592_s28 + $0x7c4] sm:$0xf0]  ;;  %v4465_v28 = vld [vmem:[%s4592_s28 + $0x8e8] sm:$0xf0] }
  0x64   : > { %2194 = vmatpush.bf16.msra.mxu3 %v4075_v48  ;;  %v3860_v48 = vld [vmem:[%s4592_s28 + $0x6a4] sm:$0xf0]  ;;  %v4424_v40 = vld [vmem:[%s4592_s28 + $0x7a4] sm:$0xf]  ;;  %vm2547_vm4 = vcmask 33792  }
  0x65   : > { %2156 = vmatpush.bf16.msra.mxu0 %v3175_v54  ;;  %v3287_v54 = vor.u32 %v4244_v42, %v3284_v43  ;;  %v3431_v43 = vor.u32 %v4280_v35, %v3428_v37  ;;  %v3866_v23 = vld [vmem:[%s4592_s28 + $0x688] sm:$0xf]  ;;  %v3542_v35 = vld [vmem:[%s4592_s28 + $0x400] sm:$0xf]  ;;  %v4312_v37 = vld [vmem:[%s4592_s28 + $0x420] sm:$0xf0] }
  0x66   : > { %2169 = vmatpush.bf16.msra.mxu1 %v3463_v55  ;;  %v3575_v55 = vor.u32 %v4316_v44, %v3572_v46  ;;  %v3104_v46 = vld [vmem:[%s4592_s28 + $0xbc] sm:$0xf0]  ;;  %v4154_v27 = vld [vmem:[%s4592_s28 + $0x8c8] sm:$0xf] }
  0x67   : > { %2182 = vmatpush.bf16.msra.mxu2 %v3751_v56  ;;  %v3863_v56 = vor.u32 %v4388_v47, %v3860_v48  ;;  %v4271_v47 = vld [vmem:[%s4592_s28 + $0x2dc] sm:$0xf]  ;;  %v4007_v48 = vor.u32 %v4424_v40, %v4004_v41  ;;  %v4118_v40 = vld [vmem:[%s4592_s28 + $0x880] sm:$0xf]  ;;  %v4456_v41 = vld [vmem:[%s4592_s28 + $0x8a0] sm:$0xf0] }
  0x68   : > { %2195 = vmatpush.bf16.msra.mxu3 %v4039_v60  ;;  %v4151_v60 = vor.u32 %v4460_v51, %v4148_v52  ;;  %v3680_v51 = vld [vmem:[%s4592_s28 + $0x53c] sm:$0xf0]  ;;  %v4415_v52 = vld [vmem:[%s4592_s28 + $0x75c] sm:$0xf] }
  0x69   : > { %2157 = vmatpush.bf16.msra.mxu0 %v3139_v2  ;;  %v3251_v2 = vor.u32 %v4235_v57, %v3248_v58  ;;  %v4190_v57 = vld [vmem:[%s4592_s28 + $0x54] sm:$0xf]  ;;  %v3068_v58 = vld [vmem:[%s4592_s28 + $0x74] sm:$0xf0] }
  0x6a   : > { %2170 = vmatpush.bf16.msra.mxu1 %v3427_v3  ;;  %v3539_v3 = vor.u32 %v4307_v59, %v3536_v61  ;;  %v4262_v59 = vld [vmem:[%s4592_s28 + $0x294] sm:$0xf]  ;;  %v3356_v61 = vld [vmem:[%s4592_s28 + $0x2b4] sm:$0xf0] }
  0x6b   : > { %2183 = vmatpush.bf16.msra.mxu2 %v3715_v4  ;;  %v3827_v4 = vor.u32 %v4379_v62, %v3824_v63  ;;  %v4334_v62 = vld [vmem:[%s4592_s28 + $0x4d4] sm:$0xf]  ;;  %v3644_v63 = vld [vmem:[%s4592_s28 + $0x4f4] sm:$0xf0] }
  0x6c   : > { %2196 = vmatpush.bf16.msra.mxu3 %v4003_v8  ;;  %v4115_v8 = vor.u32 %v4451_v0, %v4112_v1  ;;  %v4406_v0 = vld [vmem:[%s4592_s28 + $0x714] sm:$0xf]  ;;  %v3932_v1 = vld [vmem:[%s4592_s28 + $0x734] sm:$0xf0] }
  0x6d   : > { %2158 = vmatpush.bf16.msra.mxu0 %v3103_v16  ;;  %v3215_v16 = vor.u32 %v4226_v5, %v3212_v6  ;;  %v3359_v5 = vor.u32 %v4262_v59, %v3356_v61  ;;  %v3647_v6 = vor.u32 %v4334_v62, %v3644_v63  ;;  %v3758_v59 = vld [vmem:[%s4592_s28 + $0x5b0] sm:$0xf]  ;;  %v4438_v61 = vld [vmem:[%s4592_s28 + $0x810] sm:$0xf0] }
  0x6e   : > { %2171 = vmatpush.bf16.msra.mxu1 %v3391_v19  ;;  %v3503_v19 = vor.u32 %v4298_v7, %v3500_v9  ;;  %v4253_v7 = vld [vmem:[%s4592_s28 + $0x24c] sm:$0xf] }
  0x6f   : > { %2184 = vmatpush.bf16.msra.mxu2 %v3679_v20  ;;  %v3791_v20 = vor.u32 %v4370_v10, %v3788_v11  ;;  %v4325_v9 = vld [vmem:[%s4592_s28 + $0x48c] sm:$0xf]  ;;  %v3935_v10 = vor.u32 %v4406_v0, %v3932_v1  ;;  %v3608_v11 = vld [vmem:[%s4592_s28 + $0x4ac] sm:$0xf0]  ;;  %v3146_v1 = vld [vmem:[%s4592_s28 + $0xe8] sm:$0xf] }
  0x70   : > { %2197 = vmatpush.bf16.msra.mxu3 %v3967_v24  ;;  %v4079_v24 = vor.u32 %v4442_v12, %v4076_v13  ;;  %v4397_v12 = vld [vmem:[%s4592_s28 + $0x6cc] sm:$0xf]  ;;  %v3896_v13 = vld [vmem:[%s4592_s28 + $0x6ec] sm:$0xf0]  ;;  %v3611_v26 = vor.u32 %v4325_v9, %v3608_v11 }
  0x71   : > { %2159 = vmatpush.bf16.msra.mxu0 %v3067_v30  ;;  %v3179_v30 = vor.u32 %v4217_v21, %v3176_v22  ;;  %v4321_v22 = vld [vmem:[%s4592_s28 + $0x468] sm:$0xf0]  ;;  %v3899_v29 = vor.u32 %v4397_v12, %v3896_v13  ;;  %v3110_v13 = vld [vmem:[%s4592_s28 + $0xa0] sm:$0xf] }
  0x72   : > { %2172 = vmatpush.bf16.msra.mxu1 %v3355_v33  ;;  %v4208_v33 = vld [vmem:[%s4592_s28 + $0xe4] sm:$0xf]  ;;  %v4429_v9 = vld [vmem:[%s4592_s28 + $0x7c8] sm:$0xf0] }
  0x73   : > { %2185 = vmatpush.bf16.msra.mxu2 %v3643_v34  ;;  %v3140_v34 = vld [vmem:[%s4592_s28 + $0x104] sm:$0xf0] }
  0x74   : > { %2198 = vmatpush.bf16.msra.mxu3 %v3931_v38  ;;  %v4352_v38 = vld [vmem:[%s4592_s28 + $0x564] sm:$0xf]  ;;  %v3143_v42 = vor.u32 %v4208_v33, %v3140_v34  ;;  %v3254_v33 = vld [vmem:[%s4592_s28 + $0x1c0] sm:$0xf] }
  0x75   : > { %2160 = vmatpush.bf16.msra.mxu0 %v3031_v45  ;;  %v3719_v44 = vor.u32 %v4352_v38, %v3716_v39  ;;  %v4199_v45 = vld [vmem:[%s4592_s28 + $0x9c] sm:$0xf]  ;;  %v4240_v34 = vld [vmem:[%s4592_s28 + $0x1e0] sm:$0xf0]  ;;  %v3830_v38 = vld [vmem:[%s4592_s28 + $0x640] sm:$0xf] }
  0x76   : > { %2173 = vmatpush.bf16.msra.mxu1 %v3319_v49  ;;  %v3392_v49 = vld [vmem:[%s4592_s28 + $0x2fc] sm:$0xf0]  ;;  %v4384_v39 = vld [vmem:[%s4592_s28 + $0x660] sm:$0xf0] }
  0x77   : > { %2186 = vmatpush.bf16.msra.mxu2 %v3607_v50  ;;  %v4343_v50 = vld [vmem:[%s4592_s28 + $0x51c] sm:$0xf] }
  0x78   : > { %2199 = vmatpush.bf16.msra.mxu3 %v3895_v53  ;;  %2161 = vmatmul.bf16.vlgmr.msra.gmra.mxu0 %v4698_v15  ;;  %v3968_v53 = vld [vmem:[%s4592_s28 + $0x77c] sm:$0xf0] }
  0x79   : > { %2205 = vmatpush.bf16.msrb.mxu0 %v3287_v54  ;;  %2174 = vmatmul.bf16.vlgmr.msra.gmra.mxu1 %v4703_v18  ;;  %v3107_v54 = vor.u32 %v4199_v45, %v3104_v46  ;;  %v3218_v45 = vld [vmem:[%s4592_s28 + $0x178] sm:$0xf]  ;;  %v4231_v46 = vld [vmem:[%s4592_s28 + $0x198] sm:$0xf0] }
  0x7a   : > { %2218 = vmatpush.bf16.msrb.mxu1 %v3575_v55  ;;  %2187 = vmatmul.bf16.vlgmr.msra.gmra.mxu2 %v4696_v14  ;;  %v3395_v55 = vor.u32 %v4271_v47, %v3392_v49  ;;  %v3506_v47 = vld [vmem:[%s4592_s28 + $0x3b8] sm:$0xf]  ;;  %v4303_v49 = vld [vmem:[%s4592_s28 + $0x3d8] sm:$0xf0] }
  0x7b   : > { %2231 = vmatpush.bf16.msrb.mxu2 %v3863_v56  ;;  %2200 = vmatmul.bf16.vlgmr.msra.gmra.mxu3 %v4701_v17  ;;  %v3683_v56 = vor.u32 %v4343_v50, %v3680_v51  ;;  %v3794_v50 = vld [vmem:[%s4592_s28 + $0x5f8] sm:$0xf]  ;;  %v4375_v51 = vld [vmem:[%s4592_s28 + $0x618] sm:$0xf0] }
  0x7c   : > { %2244 = vmatpush.bf16.msrb.mxu3 %v4151_v60  ;;  %v3971_v60 = vor.u32 %v4415_v52, %v3968_v53  ;;  %v4082_v52 = vld [vmem:[%s4592_s28 + $0x838] sm:$0xf]  ;;  %v4447_v53 = vld [vmem:[%s4592_s28 + $0x858] sm:$0xf0] }
  0x7d   : > { %2206 = vmatpush.bf16.msrb.mxu0 %v3251_v2  ;;  %v3071_v2 = vor.u32 %v4190_v57, %v3068_v58  ;;  %v3470_v57 = vld [vmem:[%s4592_s28 + $0x370] sm:$0xf]  ;;  %v4294_v58 = vld [vmem:[%s4592_s28 + $0x390] sm:$0xf0] }
  0x7e   : > { %2219 = vmatpush.bf16.msrb.mxu1 %v3539_v3  ;;  %v4181_v3 = vld [vmem:[%s4592_s28 + $0xc] sm:$0xf]  ;;  %v3471_v63 = vor.u32 %v4294_v58, %v3470_v57 }
  0x7f   : > { %2232 = vmatpush.bf16.msrb.mxu2 %v3827_v4  ;;  %v3032_v4 = vld [vmem:[%s4592_s28 + $0x2c] sm:$0xf0]  ;;  %v4461_v57 = vld [vmem:[%s4592_s28 + $0x8cc] sm:$0xf] }
  0x80   : > { %2245 = vmatpush.bf16.msrb.mxu3 %v4115_v8  ;;  %v3320_v8 = vld [vmem:[%s4592_s28 + $0x26c] sm:$0xf0]  ;;  %v3035_v21 = vor.u32 %v4181_v3, %v3032_v4  ;;  %v3434_v3 = vld [vmem:[%s4592_s28 + $0x328] sm:$0xf] }
  0x81   : > { %2207 = vmatpush.bf16.msrb.mxu0 %v3215_v16  ;;  %v3290_v16 = vld [vmem:[%s4592_s28 + $0x208] sm:$0xf]  ;;  %v3323_v25 = vor.u32 %v4253_v7, %v3320_v8  ;;  %v4357_v7 = vld [vmem:[%s4592_s28 + $0x588] sm:$0xf0] }
  0x82   : > { %2220 = vmatpush.bf16.msrb.mxu1 %v3503_v19  ;;  %v4249_v19 = vld [vmem:[%s4592_s28 + $0x228] sm:$0xf0]  ;;  %v4010_v8 = vld [vmem:[%s4592_s28 + $0x7a8] sm:$0xf] }
  0x83   : > { %2233 = vmatpush.bf16.msrb.mxu2 %v3791_v20  ;;  %v3578_v20 = vld [vmem:[%s4592_s28 + $0x448] sm:$0xf] }
  0x84   : > { %2246 = vmatpush.bf16.msrb.mxu3 %v4079_v24  ;;  %v4393_v24 = vld [vmem:[%s4592_s28 + $0x6a8] sm:$0xf0] }
  0x85   : > { %2208 = vmatpush.bf16.msrb.mxu0 %v3179_v30  ;;  %v3291_v30 = vor.u32 %v4249_v19, %v3290_v16  ;;  %v4204_v16 = vld [vmem:[%s4592_s28 + $0xc0] sm:$0xf0]  ;;  %v3398_v19 = vld [vmem:[%s4592_s28 + $0x2e0] sm:$0xf] }
  0x86   : > { %2221 = vmatpush.bf16.msrb.mxu1 %v3467_v31  ;;  %v3579_v31 = vor.u32 %v4321_v22, %v3578_v20  ;;  %v4011_v20 = vor.u32 %v4429_v9, %v4010_v8  ;;  %v3686_v22 = vld [vmem:[%s4592_s28 + $0x520] sm:$0xf]  ;;  %v4227_v9 = vld [vmem:[%s4592_s28 + $0x17c] sm:$0xf] }
  0x87   : > { %2234 = vmatpush.bf16.msrb.mxu2 %v3755_v32  ;;  %v3867_v32 = vor.u32 %v4393_v24, %v3866_v23  ;;  %v4348_v23 = vld [vmem:[%s4592_s28 + $0x540] sm:$0xf0]  ;;  %v3974_v24 = vld [vmem:[%s4592_s28 + $0x760] sm:$0xf] }
  0x88   : > { %2247 = vmatpush.bf16.msrb.mxu3 %v4043_v36  ;;  %v4155_v36 = vor.u32 %v4465_v28, %v4154_v27  ;;  %v3687_v28 = vor.u32 %v4348_v23, %v3686_v22  ;;  %v4084_v22 = vld [vmem:[%s4592_s28 + $0x85c] sm:$0xf0] }
  0x89   : > { %2209 = vmatpush.bf16.msrb.mxu0 %v3143_v42  ;;  %v3255_v42 = vor.u32 %v4240_v34, %v3254_v33  ;;  %v4267_v33 = vld [vmem:[%s4592_s28 + $0x2b8] sm:$0xf0]  ;;  %v3650_v34 = vld [vmem:[%s4592_s28 + $0x4d8] sm:$0xf] }
  0x8a   : > { %2222 = vmatpush.bf16.msrb.mxu1 %v3431_v43  ;;  %v3543_v43 = vor.u32 %v4312_v37, %v3542_v35  ;;  %v4339_v35 = vld [vmem:[%s4592_s28 + $0x4f8] sm:$0xf0] }
  0x8b   : > { %2235 = vmatpush.bf16.msrb.mxu2 %v3719_v44  ;;  %v3831_v44 = vor.u32 %v4384_v39, %v3830_v38  ;;  %v4411_v37 = vld [vmem:[%s4592_s28 + $0x738] sm:$0xf0]  ;;  %v3038_v39 = vld [vmem:[%s4592_s28 + $0x10] sm:$0xf] }
  0x8c   : > { %2248 = vmatpush.bf16.msrb.mxu3 %v4007_v48  ;;  %v4119_v48 = vor.u32 %v4456_v41, %v4118_v40  ;;  %v4186_v40 = vld [vmem:[%s4592_s28 + $0x30] sm:$0xf0]  ;;  %v4971_v23 = vld [vmem:[#allocation1 + $0x1b] sm:$0xff] }
  0x8d   : > { %2210 = vmatpush.bf16.msrb.mxu0 %v3107_v54  ;;  %v3507_v54 = vor.u32 %v4303_v49, %v3506_v47  ;;  %v4330_v47 = vld [vmem:[%s4592_s28 + $0x4b0] sm:$0xf0] }
  0x8e   : > { %2223 = vmatpush.bf16.msrb.mxu1 %v3395_v55  ;;  %v3795_v55 = vor.u32 %v4375_v51, %v3794_v50  ;;  %v4402_v49 = vld [vmem:[%s4592_s28 + $0x6f0] sm:$0xf0]  ;;  %v4245_v50 = vld [vmem:[%s4592_s28 + $0x20c] sm:$0xf]  ;;  %v3292_v51 = vld [vmem:[%s4592_s28 + $0x22c] sm:$0xf0] }
  0x8f   : > { %2236 = vmatpush.bf16.msrb.mxu2 %v3683_v56  ;;  %v3182_v56 = vld [vmem:[%s4592_s28 + $0x130] sm:$0xf] }
  0x90   : > { %2249 = vmatpush.bf16.msrb.mxu3 %v3971_v60  ;;  %v4366_v60 = vld [vmem:[%s4592_s28 + $0x5d0] sm:$0xf0] }
  0x91   : > { %2211 = vmatpush.bf16.msrb.mxu0 %v3071_v2  ;;  %v3759_v0 = vor.u32 %v4366_v60, %v3758_v59  ;;  %v4213_v2 = vld [vmem:[%s4592_s28 + $0x108] sm:$0xf0]  ;;  %v3295_v59 = vor.u32 %v4245_v50, %v3292_v51 }
  0x92   : > { %2224 = vmatpush.bf16.msrb.mxu1 %v3359_v5  ;;  %v4285_v5 = vld [vmem:[%s4592_s28 + $0x348] sm:$0xf0] }
  0x93   : > { %2237 = vmatpush.bf16.msrb.mxu2 %v3647_v6  ;;  %v3722_v6 = vld [vmem:[%s4592_s28 + $0x568] sm:$0xf]  ;;  %v3435_v11 = vor.u32 %v4285_v5, %v3434_v3 }
  0x94   : > { %2250 = vmatpush.bf16.msrb.mxu3 %v3935_v10  ;;  %v3147_v10 = vor.u32 %v4213_v2, %v3146_v1  ;;  %v3723_v12 = vor.u32 %v4357_v7, %v3722_v6  ;;  %v3544_v1 = vld [vmem:[%s4592_s28 + $0x424] sm:$0xf0]  ;;  %v4380_v2 = vld [vmem:[%s4592_s28 + $0x644] sm:$0xf] }
  0x95   : > { %2212 = vmatpush.bf16.msrb.mxu0 %v3035_v21  ;;  %v4276_v21 = vld [vmem:[%s4592_s28 + $0x300] sm:$0xf0]  ;;  %v3832_v3 = vld [vmem:[%s4592_s28 + $0x664] sm:$0xf0] }
  0x96   : > { %2225 = vmatpush.bf16.msrb.mxu1 %v3323_v25  ;;  %v4420_v25 = vld [vmem:[%s4592_s28 + $0x780] sm:$0xf0]  ;;  %v3399_v27 = vor.u32 %v4276_v21, %v3398_v19  ;;  %v4120_v5 = vld [vmem:[%s4592_s28 + $0x8a4] sm:$0xf0]  ;;  %v3835_v8 = vor.u32 %v4380_v2, %v3832_v3  ;;  %v3796_v19 = vld [vmem:[%s4592_s28 + $0x61c] sm:$0xf0] }
  0x97   : > { %2238 = vmatpush.bf16.msrb.mxu2 %v3611_v26  ;;  %v3111_v26 = vor.u32 %v4204_v16, %v3110_v13  ;;  %v3508_v13 = vld [vmem:[%s4592_s28 + $0x3dc] sm:$0xf0]  ;;  %v4371_v16 = vld [vmem:[%s4592_s28 + $0x5fc] sm:$0xf] }
  0x98   : > { %2251 = vmatpush.bf16.msrb.mxu3 %v3899_v29  ;;  %2213 = vmatmul.bf16.vlgmr.msrb.gmra.mxu0 %v4698_v15  ;;  %v4083_v15 = vor.u32 %v4447_v53, %v4082_v52  ;;  %v3074_v29 = vld [vmem:[%s4592_s28 + $0x58] sm:$0xf]  ;;  %v4317_v52 = vld [vmem:[%s4592_s28 + $0x44c] sm:$0xf]  ;;  %v3039_v53 = vor.u32 %v4186_v40, %v3038_v39  ;;  %v4443_v21 = vld [vmem:[%s4592_s28 + $0x83c] sm:$0xf] }
  0x99   : > { %2257 = vmatpush.bf16.msra.mxu0 %v3291_v30  ;;  %2226 = vmatmul.bf16.vlgmr.msrb.gmra.mxu1 %v4703_v18  ;;  %v4046_v18 = vld [vmem:[%s4592_s28 + $0x7f0] sm:$0xf]  ;;  %v4195_v30 = vld [vmem:[%s4592_s28 + $0x78] sm:$0xf0] }
  0x9a   : > { %2270 = vmatpush.bf16.msra.mxu1 %v3579_v31  ;;  %2239 = vmatmul.bf16.vlgmr.msrb.gmra.mxu2 %v4696_v14  ;;  %v3219_v14 = vor.u32 %v4231_v46, %v3218_v45  ;;  %v4047_v4 = vor.u32 %v4438_v61, %v4046_v18  ;;  %v3362_v31 = vld [vmem:[%s4592_s28 + $0x298] sm:$0xf]  ;;  %v3075_v38 = vor.u32 %v4195_v30, %v3074_v29  ;;  %v3614_v45 = vld [vmem:[%s4592_s28 + $0x490] sm:$0xf]  ;;  %v4236_v61 = vld [vmem:[%s4592_s28 + $0x1c4] sm:$0xf] }
  0x9b   : > { %2283 = vmatpush.bf16.msra.mxu2 %v3867_v32  ;;  %2252 = vmatmul.bf16.vlgmr.msrb.gmra.mxu3 %v4701_v17  ;;  %v4222_v17 = vld [vmem:[%s4592_s28 + $0x150] sm:$0xf0]  ;;  %v3975_v32 = vor.u32 %v4420_v25, %v3974_v24  ;;  %v3363_v41 = vor.u32 %v4267_v33, %v3362_v31  ;;  %v4974_v24 = vld [vmem:[#allocation1] sm:$0xff]  ;;  %v3184_v30 = vld [vmem:[%s4592_s28 + $0x154] sm:$0xf0] }
  0x9c   : > { %2296 = vmatpush.bf16.msra.mxu3 %v4155_v36  ;;  %v3183_v62 = vor.u32 %v4222_v17, %v3182_v56  ;;  %v3938_v36 = vld [vmem:[%s4592_s28 + $0x718] sm:$0xf]  ;;  %v3615_v17 = vor.u32 %v4330_v47, %v3614_v45  ;;  %v4218_v29 = vld [vmem:[%s4592_s28 + $0x134] sm:$0xf]  ;;  %v3436_v45 = vld [vmem:[%s4592_s28 + $0x34c] sm:$0xf0] }
  0x9d   : > { %2258 = vmatpush.bf16.msra.mxu0 %v3255_v42  ;;  %v3651_v42 = vor.u32 %v4339_v35, %v3650_v34  ;;  %v3939_v46 = vor.u32 %v4411_v37, %v3938_v36  ;;  %v4290_v31 = vld [vmem:[%s4592_s28 + $0x374] sm:$0xf]  ;;  %v3472_v33 = vld [vmem:[%s4592_s28 + $0x394] sm:$0xf0]  ;;  %v3724_v47 = vld [vmem:[%s4592_s28 + $0x58c] sm:$0xf0] }
  0x9e   : > { %2271 = vmatpush.bf16.msra.mxu1 %v3543_v43  ;;  %v3326_v43 = vld [vmem:[%s4592_s28 + $0x250] sm:$0xf]  ;;  %v4362_v34 = vld [vmem:[%s4592_s28 + $0x5b4] sm:$0xf]  ;;  %v3760_v35 = vld [vmem:[%s4592_s28 + $0x5d4] sm:$0xf0]  ;;  %v3475_v39 = vor.u32 %v4290_v31, %v3472_v33 }
  0x9f   : > { %2284 = vmatpush.bf16.msra.mxu2 %v3831_v44  ;;  %v4258_v44 = vld [vmem:[%s4592_s28 + $0x270] sm:$0xf0]  ;;  %v4048_v37 = vld [vmem:[%s4592_s28 + $0x814] sm:$0xf0]  ;;  %v3763_v40 = vor.u32 %v4362_v34, %v3760_v35  ;;  %v3586_v34 = vld [vmem:[%s4592_s28 + $0x450] sm:$0xf] }
  0xa0   : > { %2297 = vmatpush.bf16.msra.mxu3 %v4119_v48  ;;  %v3902_v48 = vld [vmem:[%s4592_s28 + $0x6d0] sm:$0xf]  ;;  %v3327_v56 = vor.u32 %v4258_v44, %v3326_v43  ;;  %v4434_v36 = vld [vmem:[%s4592_s28 + $0x7f4] sm:$0xf]  ;;  %v4281_v43 = vld [vmem:[%s4592_s28 + $0x32c] sm:$0xf] }
  0xa1   : > { %2259 = vmatpush.bf16.msra.mxu0 %v3219_v14  ;;  %v3580_v14 = vld [vmem:[%s4592_s28 + $0x46c] sm:$0xf0]  ;;  %v3903_v58 = vor.u32 %v4402_v49, %v3902_v48  ;;  %v4051_v44 = vor.u32 %v4434_v36, %v4048_v37  ;;  %v4425_v48 = vld [vmem:[%s4592_s28 + $0x7ac] sm:$0xf]  ;;  %v3439_v51 = vor.u32 %v4281_v43, %v3436_v45  ;;  %v4250_v33 = vld [vmem:[%s4592_s28 + $0x230] sm:$0xf0] }
  0xa2   : > { %2272 = vmatpush.bf16.msra.mxu1 %v3507_v54  ;;  %v4389_v54 = vld [vmem:[%s4592_s28 + $0x68c] sm:$0xf]  ;;  %v3583_v60 = vor.u32 %v4317_v52, %v3580_v14  ;;  %v4012_v49 = vld [vmem:[%s4592_s28 + $0x7cc] sm:$0xf0]  ;;  %v3112_v14 = vld [vmem:[%s4592_s28 + $0xc4] sm:$0xf0] }
  0xa3   : > { %2285 = vmatpush.bf16.msra.mxu2 %v3795_v55  ;;  %v3868_v55 = vld [vmem:[%s4592_s28 + $0x6ac] sm:$0xf0]  ;;  %v4466_v45 = vld [vmem:[%s4592_s28 + $0x8f0] sm:$0xf0] }
  0xa4   : > { %2298 = vmatpush.bf16.msra.mxu3 %v4083_v15  ;;  %v4156_v15 = vld [vmem:[%s4592_s28 + $0x8ec] sm:$0xf0]  ;;  %v3871_v18 = vor.u32 %v4389_v54, %v3868_v55  ;;  %v4272_v54 = vld [vmem:[%s4592_s28 + $0x2e4] sm:$0xf]  ;;  %v4015_v55 = vor.u32 %v4425_v48, %v4012_v49 }
  0xa5   : > { %2260 = vmatpush.bf16.msra.mxu0 %v3183_v62  ;;  %v3256_v62 = vld [vmem:[%s4592_s28 + $0x1e4] sm:$0xf0] }
  0xa6   : > { %2273 = vmatpush.bf16.msra.mxu1 %v3471_v63  ;;  %v4308_v63 = vld [vmem:[%s4592_s28 + $0x404] sm:$0xf]  ;;  %v3259_v6 = vor.u32 %v4236_v61, %v3256_v62 }
  0xa7   : > { %2286 = vmatpush.bf16.msra.mxu2 %v3759_v0  ;;  %v4159_v0 = vor.u32 %v4461_v57, %v4156_v15  ;;  %v3547_v7 = vor.u32 %v4308_v63, %v3544_v1  ;;  %v3688_v57 = vld [vmem:[%s4592_s28 + $0x544] sm:$0xf0]  ;;  %v4416_v15 = vld [vmem:[%s4592_s28 + $0x764] sm:$0xf]  ;;  %v4191_v63 = vld [vmem:[%s4592_s28 + $0x5c] sm:$0xf] }
  0xa8   : > { %2299 = vmatpush.bf16.msra.mxu3 %v4047_v4  ;;  %v4452_v4 = vld [vmem:[%s4592_s28 + $0x884] sm:$0xf]  ;;  %v4263_v1 = vld [vmem:[%s4592_s28 + $0x29c] sm:$0xf] }
  0xa9   : > { %2261 = vmatpush.bf16.msra.mxu0 %v3147_v10  ;;  %v3220_v10 = vld [vmem:[%s4592_s28 + $0x19c] sm:$0xf0] }
  0xaa   : > { %2274 = vmatpush.bf16.msra.mxu1 %v3435_v11  ;;  %v4299_v11 = vld [vmem:[%s4592_s28 + $0x3bc] sm:$0xf]  ;;  %v3223_v25 = vor.u32 %v4227_v9, %v3220_v10 }
  0xab   : > { %2287 = vmatpush.bf16.msra.mxu2 %v3723_v12  ;;  %v4123_v12 = vor.u32 %v4452_v4, %v4120_v5  ;;  %v3364_v4 = vld [vmem:[%s4592_s28 + $0x2bc] sm:$0xf0]  ;;  %v4335_v5 = vld [vmem:[%s4592_s28 + $0x4dc] sm:$0xf] }
  0xac   : > { %2300 = vmatpush.bf16.msra.mxu3 %v4011_v20  ;;  %v4966_v20 = vld [vmem:[#allocation1 + $0x12] sm:$0xff] }
  0xad   : > { %2262 = vmatpush.bf16.msra.mxu0 %v3111_v26  ;;  %v4977_v26 = vld [vmem:[#allocation1 + $0x9] sm:$0xff] }
  0xae   : > { %2275 = vmatpush.bf16.msra.mxu1 %v3399_v27  ;;  %v3511_v27 = vor.u32 %v4299_v11, %v3508_v13  ;;  %v4182_v11 = vld [vmem:[%s4592_s28 + $0x14] sm:$0xf] }
  0xaf   : > { %2288 = vmatpush.bf16.msra.mxu2 %v3687_v28  ;;  %v3799_v28 = vor.u32 %v4371_v16, %v3796_v19  ;;  %v3367_v16 = vor.u32 %v4263_v1, %v3364_v4  ;;  %v3802_v1 = vld [vmem:[%s4592_s28 + $0x600] sm:$0xf]  ;;  %v4448_v4 = vld [vmem:[%s4592_s28 + $0x860] sm:$0xf0] }
  0xb0   : > { %2301 = vmatpush.bf16.msra.mxu3 %v3975_v32  ;;  %v4087_v32 = vor.u32 %v4443_v21, %v4084_v22  ;;  %v4254_v21 = vld [vmem:[%s4592_s28 + $0x254] sm:$0xf]  ;;  %v3328_v22 = vld [vmem:[%s4592_s28 + $0x274] sm:$0xf0] }
  0xb1   : > { %2263 = vmatpush.bf16.msra.mxu0 %v3075_v38  ;;  %v3187_v38 = vor.u32 %v4218_v29, %v3184_v30  ;;  %v4398_v29 = vld [vmem:[%s4592_s28 + $0x6d4] sm:$0xf]  ;;  %v3904_v30 = vld [vmem:[%s4592_s28 + $0x6f4] sm:$0xf0] }
  0xb2   : > { %2276 = vmatpush.bf16.msra.mxu1 %v3363_v41  ;;  %v4209_v41 = vld [vmem:[%s4592_s28 + $0xec] sm:$0xf] }
  0xb3   : > { %2289 = vmatpush.bf16.msra.mxu2 %v3651_v42  ;;  %v3148_v42 = vld [vmem:[%s4592_s28 + $0x10c] sm:$0xf0] }
  0xb4   : > { %2302 = vmatpush.bf16.msra.mxu3 %v3939_v46  ;;  %v4353_v46 = vld [vmem:[%s4592_s28 + $0x56c] sm:$0xf]  ;;  %v3151_v50 = vor.u32 %v4209_v41, %v3148_v42  ;;  %v3331_v42 = vor.u32 %v4254_v21, %v3328_v22  ;;  %v4439_v21 = vld [vmem:[%s4592_s28 + $0x818] sm:$0xf0] }
  0xb5   : > { %2264 = vmatpush.bf16.msra.mxu0 %v3039_v53  ;;  %v3727_v52 = vor.u32 %v4353_v46, %v3724_v47  ;;  %v4200_v53 = vld [vmem:[%s4592_s28 + $0xa4] sm:$0xf]  ;;  %v3907_v46 = vor.u32 %v4398_v29, %v3904_v30  ;;  %v3154_v30 = vld [vmem:[%s4592_s28 + $0xf0] sm:$0xf] }
  0xb6   : > { %2277 = vmatpush.bf16.msra.mxu1 %v3327_v56  ;;  %v3400_v56 = vld [vmem:[%s4592_s28 + $0x304] sm:$0xf0] }
  0xb7   : > { %2290 = vmatpush.bf16.msra.mxu2 %v3615_v17  ;;  %v4344_v17 = vld [vmem:[%s4592_s28 + $0x524] sm:$0xf]  ;;  %v3403_v61 = vor.u32 %v4272_v54, %v3400_v56  ;;  %v4313_v54 = vld [vmem:[%s4592_s28 + $0x428] sm:$0xf0] }
  0xb8   : > { %2303 = vmatpush.bf16.msra.mxu3 %v3903_v58  ;;  %2265 = vmatmul.bf16.vlgmr.msra.gmra.mxu0 %v4974_v24  ;;  %v3976_v58 = vld [vmem:[%s4592_s28 + $0x784] sm:$0xf0]  ;;  %v3691_v62 = vor.u32 %v4344_v17, %v3688_v57  ;;  %v4385_v56 = vld [vmem:[%s4592_s28 + $0x668] sm:$0xf0] }
  0xb9   : > { %2309 = vmatpush.bf16.msrb.mxu0 %v3295_v59  ;;  %2278 = vmatmul.bf16.vlgmr.msra.gmra.mxu1 %v4977_v26  ;;  %v2058_v59 = vpop.f32.mrf.mxu0  ;;  %v3979_v3 = vor.u32 %v4416_v15, %v3976_v58  ;;  %v4126_v17 = vld [vmem:[%s4592_s28 + $0x888] sm:$0xf]  ;;  %v4457_v57 = vld [vmem:[%s4592_s28 + $0x8a8] sm:$0xf0] }
  0xba   : > { %2322 = vmatpush.bf16.msrb.mxu1 %v3583_v60  ;;  %2291 = vmatmul.bf16.vlgmr.msra.gmra.mxu2 %v4966_v20  ;;  %v3115_v60 = vor.u32 %v4200_v53, %v3112_v14 }
  0xbb   : > { %2335 = vmatpush.bf16.msrb.mxu2 %v3871_v18  ;;  %2304 = vmatmul.bf16.vlgmr.msra.gmra.mxu3 %v4971_v23  ;;  %v2071_v18 = vpop.f32.mrf.mxu1 }
  0xbc   : > { %2348 = vmatpush.bf16.msrb.mxu3 %v4159_v0  ;;  %v3076_v0 = vld [vmem:[%s4592_s28 + $0x7c] sm:$0xf0]  ;;  %v2072_v2 = vadd.f32 %v2071_v18, %v2058_v59 }
  0xbd   : > { %2310 = vmatpush.bf16.msrb.mxu0 %v3259_v6  ;;  %v3652_v6 = vld [vmem:[%s4592_s28 + $0x4fc] sm:$0xf0]  ;;  %v2084_v9 = vpop.f32.mrf.mxu2  ;;  %v3079_v10 = vor.u32 %v4191_v63, %v3076_v0  ;;  %v4127_v63 = vor.u32 %v4457_v57, %v4126_v17  ;;  %v4304_v0 = vld [vmem:[%s4592_s28 + $0x3e0] sm:$0xf0] }
  0xbe   : > { %2323 = vmatpush.bf16.msrb.mxu1 %v3547_v7  ;;  %v4407_v7 = vld [vmem:[%s4592_s28 + $0x71c] sm:$0xf]  ;;  %v2085_v13 = vadd.f32 %v2084_v9, %v2072_v2  ;;  %v3655_v19 = vor.u32 %v4335_v5, %v3652_v6  ;;  %v3226_v18 = vld [vmem:[%s4592_s28 + $0x180] sm:$0xf]  ;;  %v4376_v2 = vld [vmem:[%s4592_s28 + $0x620] sm:$0xf0] }
  0xbf   : > { %2336 = vmatpush.bf16.msrb.mxu2 %v3835_v8  ;;  %v3940_v8 = vld [vmem:[%s4592_s28 + $0x73c] sm:$0xf0]  ;;  %v4223_v9 = vld [vmem:[%s4592_s28 + $0x158] sm:$0xf0]  ;;  %v4196_v57 = vld [vmem:[%s4592_s28 + $0x80] sm:$0xf0] }
  0xc0   : > { %2349 = vmatpush.bf16.msrb.mxu3 %v4123_v12  ;;  %v3040_v12 = vld [vmem:[%s4592_s28 + $0x34] sm:$0xf0]  ;;  %v2097_v31 = vpop.f32.mrf.mxu3  ;;  %v3082_v17 = vld [vmem:[%s4592_s28 + $0x60] sm:$0xf] }
  0xc1   : > { %2311 = vmatpush.bf16.msrb.mxu0 %v3223_v25  ;;  %v4326_v25 = vld [vmem:[%s4592_s28 + $0x494] sm:$0xf]  ;;  %v5023_v35 = vadd.f32 %v2097_v31, %v2085_v13  ;;  %v2060_v36 = vpop.f32.mrf.mxu0  ;;  %v3043_v37 = vor.u32 %v4182_v11, %v3040_v12  ;;  %v4295_v12 = vld [vmem:[%s4592_s28 + $0x398] sm:$0xf0]  ;;  %v3766_v13 = vld [vmem:[%s4592_s28 + $0x5b8] sm:$0xf] }
  0xc2   : > { %2324 = vmatpush.bf16.msrb.mxu1 %v3511_v27  ;;  %v3943_v27 = vor.u32 %v4407_v7, %v3940_v8  ;;  %v3803_v7 = vor.u32 %v4376_v2, %v3802_v1  ;;  %v3190_v8 = vld [vmem:[%s4592_s28 + $0x138] sm:$0xf]  ;;  %v4214_v31 = vld [vmem:[%s4592_s28 + $0x110] sm:$0xf0]  ;;  %v3730_v36 = vld [vmem:[%s4592_s28 + $0x570] sm:$0xf] }
  0xc3   : > { %2337 = vmatpush.bf16.msrb.mxu2 %v3799_v28  ;;  %v3616_v28 = vld [vmem:[%s4592_s28 + $0x4b4] sm:$0xf0]  ;;  %v2073_v41 = vpop.f32.mrf.mxu1  ;;  %v3191_v22 = vor.u32 %v4223_v9, %v3190_v8  ;;  %v4187_v2 = vld [vmem:[%s4592_s28 + $0x38] sm:$0xf0] }
  0xc4   : > { %2350 = vmatpush.bf16.msrb.mxu3 %v4087_v32  ;;  %v3298_v32 = vld [vmem:[%s4592_s28 + $0x210] sm:$0xf]  ;;  %v3619_v43 = vor.u32 %v4326_v25, %v3616_v28  ;;  %v3046_v1 = vld [vmem:[%s4592_s28 + $0x18] sm:$0xf] }
  0xc5   : > { %2312 = vmatpush.bf16.msrb.mxu0 %v3187_v38  ;;  %v4322_v38 = vld [vmem:[%s4592_s28 + $0x470] sm:$0xf0]  ;;  %v3299_v47 = vor.u32 %v4250_v33, %v3298_v32  ;;  %v2086_v53 = vpop.f32.mrf.mxu2  ;;  %v3442_v32 = vld [vmem:[%s4592_s28 + $0x330] sm:$0xf] }
  0xc6   : > { %2325 = vmatpush.bf16.msrb.mxu1 %v3475_v39  ;;  %v3874_v39 = vld [vmem:[%s4592_s28 + $0x690] sm:$0xf]  ;;  %v3587_v48 = vor.u32 %v4322_v38, %v3586_v34  ;;  %v4286_v34 = vld [vmem:[%s4592_s28 + $0x350] sm:$0xf0]  ;;  %v4421_v53 = vld [vmem:[%s4592_s28 + $0x788] sm:$0xf0] }
  0xc7   : > { %2338 = vmatpush.bf16.msrb.mxu2 %v3763_v40  ;;  %v4394_v40 = vld [vmem:[%s4592_s28 + $0x6b0] sm:$0xf0]  ;;  %v4018_v38 = vld [vmem:[%s4592_s28 + $0x7b0] sm:$0xf]  ;;  %v3443_v41 = vor.u32 %v4286_v34, %v3442_v32  ;;  %v4164_v34 = vld [vmem:[%s4592_s28 + $0x8f4] sm:$0xf0] }
  0xc8   : > { %2351 = vmatpush.bf16.msrb.mxu3 %v4051_v44  ;;  %v4162_v44 = vld [vmem:[%s4592_s28 + $0x8d0] sm:$0xf]  ;;  %v3875_v49 = vor.u32 %v4394_v40, %v3874_v39  ;;  %v2099_v58 = vpop.f32.mrf.mxu3  ;;  %v4430_v39 = vld [vmem:[%s4592_s28 + $0x7d0] sm:$0xf0]  ;;  %v3155_v40 = vor.u32 %v4214_v31, %v3154_v30  ;;  %v3876_v30 = vld [vmem:[%s4592_s28 + $0x6b4] sm:$0xf0] }
  0xc9   : > { %2313 = vmatpush.bf16.msrb.mxu0 %v3151_v50  ;;  %v3262_v50 = vld [vmem:[%s4592_s28 + $0x1c8] sm:$0xf]  ;;  %v4163_v14 = vor.u32 %v4466_v45, %v4162_v44  ;;  %v4205_v45 = vld [vmem:[%s4592_s28 + $0xc8] sm:$0xf0] }
  0xca   : > { %2326 = vmatpush.bf16.msrb.mxu1 %v3439_v51  ;;  %v4241_v51 = vld [vmem:[%s4592_s28 + $0x1e8] sm:$0xf0]  ;;  %v3118_v44 = vld [vmem:[%s4592_s28 + $0xa8] sm:$0xf] }
  0xcb   : > { %2339 = vmatpush.bf16.msrb.mxu2 %v3727_v52  ;;  %v3550_v52 = vld [vmem:[%s4592_s28 + $0x408] sm:$0xf]  ;;  %v3263_v15 = vor.u32 %v4241_v51, %v3262_v50  ;;  %v4349_v51 = vld [vmem:[%s4592_s28 + $0x548] sm:$0xf0] }
  0xcc   : > { %2352 = vmatpush.bf16.msrb.mxu3 %v4015_v55  ;;  %v3838_v55 = vld [vmem:[%s4592_s28 + $0x648] sm:$0xf]  ;;  %v3551_v59 = vor.u32 %v4313_v54, %v3550_v52 }
  0xcd   : > { %2314 = vmatpush.bf16.msrb.mxu0 %v3115_v60  ;;  %v3839_v60 = vor.u32 %v4385_v56, %v3838_v55  ;;  %v3694_v50 = vld [vmem:[%s4592_s28 + $0x528] sm:$0xf] }
  0xce   : > { %2327 = vmatpush.bf16.msrb.mxu1 %v3403_v61  ;;  %v4232_v61 = vld [vmem:[%s4592_s28 + $0x1a0] sm:$0xf0]  ;;  %v3982_v52 = vld [vmem:[%s4592_s28 + $0x768] sm:$0xf]  ;;  %v3695_v56 = vor.u32 %v4349_v51, %v3694_v50  ;;  %v4128_v50 = vld [vmem:[%s4592_s28 + $0x8ac] sm:$0xf0] }
  0xcf   : > { %2340 = vmatpush.bf16.msrb.mxu2 %v3691_v62  ;;  %v3514_v62 = vld [vmem:[%s4592_s28 + $0x3c0] sm:$0xf]  ;;  %v3227_v5 = vor.u32 %v4232_v61, %v3226_v18  ;;  %v4340_v61 = vld [vmem:[%s4592_s28 + $0x500] sm:$0xf0] }
  0xd0   : > { %2353 = vmatpush.bf16.msrb.mxu3 %v3979_v3  ;;  %v4090_v3 = vld [vmem:[%s4592_s28 + $0x840] sm:$0xf]  ;;  %v3515_v6 = vor.u32 %v4304_v0, %v3514_v62  ;;  %v3083_v0 = vor.u32 %v4196_v57, %v3082_v17  ;;  %v3516_v17 = vld [vmem:[%s4592_s28 + $0x3e4] sm:$0xf0]  ;;  %v4372_v57 = vld [vmem:[%s4592_s28 + $0x604] sm:$0xf] }
  0xd1   : > { %2315 = vmatpush.bf16.msrb.mxu0 %v3079_v10  ;;  %v3478_v10 = vld [vmem:[%s4592_s28 + $0x378] sm:$0xf]  ;;  %v4091_v11 = vor.u32 %v4448_v4, %v4090_v3  ;;  %v3658_v18 = vld [vmem:[%s4592_s28 + $0x4e0] sm:$0xf] }
  0xd2   : > { %2328 = vmatpush.bf16.msrb.mxu1 %v3367_v16  ;;  %v4367_v16 = vld [vmem:[%s4592_s28 + $0x5d8] sm:$0xf0]  ;;  %v3946_v62 = vld [vmem:[%s4592_s28 + $0x720] sm:$0xf]  ;;  %v3659_v4 = vor.u32 %v4340_v61, %v3658_v18 }
  0xd3   : > { %2341 = vmatpush.bf16.msrb.mxu2 %v3655_v19  ;;  %v4054_v19 = vld [vmem:[%s4592_s28 + $0x7f8] sm:$0xf]  ;;  %v3767_v28 = vor.u32 %v4367_v16, %v3766_v13  ;;  %v4246_v16 = vld [vmem:[%s4592_s28 + $0x214] sm:$0xf] }
  0xd4   : > { %2354 = vmatpush.bf16.msrb.mxu3 %v3943_v27  ;;  %v3479_v27 = vor.u32 %v4295_v12, %v3478_v10  ;;  %v4055_v33 = vor.u32 %v4439_v21, %v4054_v19  ;;  %v4331_v10 = vld [vmem:[%s4592_s28 + $0x4b8] sm:$0xf0]  ;;  %v3300_v19 = vld [vmem:[%s4592_s28 + $0x234] sm:$0xf0]  ;;  %v4318_v21 = vld [vmem:[%s4592_s28 + $0x454] sm:$0xf] }
  0xd5   : > { %2316 = vmatpush.bf16.msrb.mxu0 %v3043_v37  ;;  %v5058_v25 = vpop.f32.mrf.mxu0  ;;  %v4358_v37 = vld [vmem:[%s4592_s28 + $0x590] sm:$0xf0]  ;;  %v4403_v12 = vld [vmem:[%s4592_s28 + $0x6f8] sm:$0xf0] }
  0xd6   : > { %2329 = vmatpush.bf16.msrb.mxu1 %v3331_v42  ;;  %v5060_v29 = vpop.f32.mrf.mxu1  ;;  %v3731_v42 = vor.u32 %v4358_v37, %v3730_v36  ;;  %v3303_v37 = vor.u32 %v4246_v16, %v3300_v19 }
  0xd7   : > { %2342 = vmatpush.bf16.msrb.mxu2 %v3619_v43 }
  0xd8   : > { %2355 = vmatpush.bf16.msrb.mxu3 %v3907_v46  ;;  %2317 = vmatmul.bf16.vlgmr.msrb.gmra.mxu0 %v4974_v24  ;;  %v3406_v46 = vld [vmem:[%s4592_s28 + $0x2e8] sm:$0xf] }
  0xd9   : > { %2361 = vmatpush.bf16.msra.mxu0 %v3299_v47  ;;  %2330 = vmatmul.bf16.vlgmr.msrb.gmra.mxu1 %v4977_v26  ;;  %v4019_v47 = vor.u32 %v4430_v39, %v4018_v38 }
  0xda   : > { %2374 = vmatpush.bf16.msra.mxu1 %v3587_v48  ;;  %2343 = vmatmul.bf16.vlgmr.msrb.gmra.mxu2 %v4966_v20 }
  0xdb   : > { %2387 = vmatpush.bf16.msra.mxu2 %v3875_v49  ;;  %2356 = vmatmul.bf16.vlgmr.msrb.gmra.mxu3 %v4971_v23  ;;  %v4277_v49 = vld [vmem:[%s4592_s28 + $0x308] sm:$0xf0] }
  0xdc   : > { %2400 = vmatpush.bf16.msra.mxu3 %v4163_v14  ;;  %v3119_v14 = vor.u32 %v4205_v45, %v3118_v44  ;;  %v3407_v55 = vor.u32 %v4277_v49, %v3406_v46  ;;  %v3552_v45 = vld [vmem:[%s4592_s28 + $0x42c] sm:$0xf0]  ;;  %v4381_v46 = vld [vmem:[%s4592_s28 + $0x64c] sm:$0xf] }
  0xdd   : > { %2362 = vmatpush.bf16.msra.mxu0 %v3263_v15  ;;  %v5070_v43 = vpop.f32.mrf.mxu2  ;;  %v2112_v54 = vpop.f32.mrf.mxu0  ;;  %v3370_v15 = vld [vmem:[%s4592_s28 + $0x2a0] sm:$0xf]  ;;  %v4453_v49 = vld [vmem:[%s4592_s28 + $0x88c] sm:$0xf] }
  0xde   : > { %2375 = vmatpush.bf16.msra.mxu1 %v3551_v59  ;;  %v5075_v48 = vpop.f32.mrf.mxu3  ;;  %v2125_v58 = vpop.f32.mrf.mxu1  ;;  %v3983_v59 = vor.u32 %v4421_v53, %v3982_v52  ;;  %v3228_v54 = vld [vmem:[%s4592_s28 + $0x1a4] sm:$0xf0] }
  0xdf   : > { %2388 = vmatpush.bf16.msra.mxu2 %v3839_v60  ;;  %v4268_v60 = vld [vmem:[%s4592_s28 + $0x2c0] sm:$0xf0] }
  0xe0   : > { %2401 = vmatpush.bf16.msra.mxu3 %v4127_v63  ;;  %v4412_v63 = vld [vmem:[%s4592_s28 + $0x740] sm:$0xf0]  ;;  %v3371_v3 = vor.u32 %v4268_v60, %v3370_v15  ;;  %v3804_v15 = vld [vmem:[%s4592_s28 + $0x624] sm:$0xf0] }
  0xe1   : > { %2363 = vmatpush.bf16.msra.mxu0 %v3227_v5  ;;  %v3334_v5 = vld [vmem:[%s4592_s28 + $0x258] sm:$0xf]  ;;  %v3947_v9 = vor.u32 %v4412_v63, %v3946_v62  ;;  %v4444_v58 = vld [vmem:[%s4592_s28 + $0x844] sm:$0xf]  ;;  %v3807_v61 = vor.u32 %v4372_v57, %v3804_v15  ;;  %v4219_v62 = vld [vmem:[%s4592_s28 + $0x13c] sm:$0xf] }
  0xe2   : > { %2376 = vmatpush.bf16.msra.mxu1 %v3515_v6  ;;  %v4259_v6 = vld [vmem:[%s4592_s28 + $0x278] sm:$0xf0]  ;;  %v3192_v63 = vld [vmem:[%s4592_s28 + $0x15c] sm:$0xf0]  ;;  %v3660_v57 = vld [vmem:[%s4592_s28 + $0x504] sm:$0xf0] }
  0xe3   : > { %2389 = vmatpush.bf16.msra.mxu2 %v3803_v7  ;;  %v3622_v7 = vld [vmem:[%s4592_s28 + $0x498] sm:$0xf]  ;;  %v3335_v31 = vor.u32 %v4259_v6, %v3334_v5  ;;  %v4435_v5 = vld [vmem:[%s4592_s28 + $0x7fc] sm:$0xf]  ;;  %v4056_v6 = vld [vmem:[%s4592_s28 + $0x81c] sm:$0xf0] }
  0xe4   : > { %2402 = vmatpush.bf16.msra.mxu3 %v4091_v11  ;;  %v3910_v11 = vld [vmem:[%s4592_s28 + $0x6d8] sm:$0xf]  ;;  %v3623_v32 = vor.u32 %v4331_v10, %v3622_v7  ;;  %v3195_v7 = vor.u32 %v4219_v62, %v3192_v63  ;;  %v4059_v19 = vor.u32 %v4435_v5, %v4056_v6  ;;  %v4408_v15 = vld [vmem:[%s4592_s28 + $0x724] sm:$0xf]  ;;  %v4255_v63 = vld [vmem:[%s4592_s28 + $0x25c] sm:$0xf] }
  0xe5   : > { %2364 = vmatpush.bf16.msra.mxu0 %v3191_v22  ;;  %v2138_v8 = vpop.f32.mrf.mxu2  ;;  %v3047_v22 = vor.u32 %v4187_v2, %v3046_v1  ;;  %v3911_v36 = vor.u32 %v4403_v12, %v3910_v11  ;;  %v3480_v2 = vld [vmem:[%s4592_s28 + $0x39c] sm:$0xf0]  ;;  %v4210_v11 = vld [vmem:[%s4592_s28 + $0xf4] sm:$0xf]  ;;  %v3156_v12 = vld [vmem:[%s4592_s28 + $0x114] sm:$0xf0] }
  0xe6   : > { %2377 = vmatpush.bf16.msra.mxu1 %v3479_v27  ;;  %v2151_v13 = vpop.f32.mrf.mxu3  ;;  %v3588_v27 = vld [vmem:[%s4592_s28 + $0x474] sm:$0xf0]  ;;  %v4399_v5 = vld [vmem:[%s4592_s28 + $0x6dc] sm:$0xf]  ;;  %v3912_v6 = vld [vmem:[%s4592_s28 + $0x6fc] sm:$0xf0] }
  0xe7   : > { %2390 = vmatpush.bf16.msra.mxu2 %v3767_v28  ;;  %v4390_v28 = vld [vmem:[%s4592_s28 + $0x694] sm:$0xf]  ;;  %v3591_v38 = vor.u32 %v4318_v21, %v3588_v27  ;;  %v3444_v21 = vld [vmem:[%s4592_s28 + $0x354] sm:$0xf0] }
  0xe8   : > { %2403 = vmatpush.bf16.msra.mxu3 %v4055_v33  ;;  %v4462_v33 = vld [vmem:[%s4592_s28 + $0x8d4] sm:$0xf]  ;;  %v3879_v39 = vor.u32 %v4390_v28, %v3876_v30  ;;  %v3732_v27 = vld [vmem:[%s4592_s28 + $0x594] sm:$0xf0] }
  0xe9   : > { %2365 = vmatpush.bf16.msra.mxu0 %v3155_v40  ;;  %v4237_v40 = vld [vmem:[%s4592_s28 + $0x1cc] sm:$0xf]  ;;  %v4167_v44 = vor.u32 %v4462_v33, %v4164_v34  ;;  %v4282_v13 = vld [vmem:[%s4592_s28 + $0x334] sm:$0xf]  ;;  %v4020_v30 = vld [vmem:[%s4592_s28 + $0x7d4] sm:$0xf0] }
  0xea   : > { %2378 = vmatpush.bf16.msra.mxu1 %v3443_v41  ;;  %v3264_v41 = vld [vmem:[%s4592_s28 + $0x1ec] sm:$0xf0]  ;;  %v4426_v28 = vld [vmem:[%s4592_s28 + $0x7b4] sm:$0xf]  ;;  %v4201_v34 = vld [vmem:[%s4592_s28 + $0xac] sm:$0xf] }
  0xeb   : > { %2391 = vmatpush.bf16.msra.mxu2 %v3731_v42  ;;  %v4309_v42 = vld [vmem:[%s4592_s28 + $0x40c] sm:$0xf]  ;;  %v3267_v51 = vor.u32 %v4237_v40, %v3264_v41  ;;  %v3408_v40 = vld [vmem:[%s4592_s28 + $0x30c] sm:$0xf0] }
  0xec   : > { %2404 = vmatpush.bf16.msra.mxu3 %v4019_v47  ;;  %v3840_v47 = vld [vmem:[%s4592_s28 + $0x66c] sm:$0xf0]  ;;  %v3555_v52 = vor.u32 %v4309_v42, %v3552_v45  ;;  %v4345_v41 = vld [vmem:[%s4592_s28 + $0x52c] sm:$0xf] }
  0xed   : > { %2366 = vmatpush.bf16.msra.mxu0 %v3119_v14  ;;  %v3843_v53 = vor.u32 %v4381_v46, %v3840_v47  ;;  %v4228_v14 = vld [vmem:[%s4592_s28 + $0x184] sm:$0xf]  ;;  %v3696_v42 = vld [vmem:[%s4592_s28 + $0x54c] sm:$0xf0]  ;;  %v4417_v45 = vld [vmem:[%s4592_s28 + $0x76c] sm:$0xf] }
  0xee   : > { %2379 = vmatpush.bf16.msra.mxu1 %v3407_v55  ;;  %v4300_v55 = vld [vmem:[%s4592_s28 + $0x3c4] sm:$0xf]  ;;  %v3231_v60 = vor.u32 %v4228_v14, %v3228_v54  ;;  %v3984_v46 = vld [vmem:[%s4592_s28 + $0x78c] sm:$0xf0] }
  0xef   : > { %2392 = vmatpush.bf16.msra.mxu2 %v3695_v56  ;;  %v4131_v56 = vor.u32 %v4453_v49, %v4128_v50  ;;  %v3519_v18 = vor.u32 %v4300_v55, %v3516_v17  ;;  %v4264_v14 = vld [vmem:[%s4592_s28 + $0x2a4] sm:$0xf]  ;;  %v3987_v55 = vor.u32 %v4417_v45, %v3984_v46  ;;  %v4386_v45 = vld [vmem:[%s4592_s28 + $0x670] sm:$0xf0]  ;;  %v4134_v46 = vld [vmem:[%s4592_s28 + $0x890] sm:$0xf] }
  0xf0   : > { %2405 = vmatpush.bf16.msra.mxu3 %v3983_v59  ;;  %v4092_v59 = vld [vmem:[%s4592_s28 + $0x864] sm:$0xf0]  ;;  %v4336_v17 = vld [vmem:[%s4592_s28 + $0x4e4] sm:$0xf] }
  0xf1   : > { %2367 = vmatpush.bf16.msra.mxu0 %v3083_v0  ;;  %v4291_v0 = vld [vmem:[%s4592_s28 + $0x37c] sm:$0xf]  ;;  %v4095_v1 = vor.u32 %v4444_v58, %v4092_v59  ;;  %v3948_v58 = vld [vmem:[%s4592_s28 + $0x744] sm:$0xf0]  ;;  %v3663_v62 = vor.u32 %v4336_v17, %v3660_v57  ;;  %v4377_v17 = vld [vmem:[%s4592_s28 + $0x628] sm:$0xf0]  ;;  %v2124_v57 = vadd.f32 %v5060_v29, %v5058_v25 }
  0xf2   : > { %2380 = vmatpush.bf16.msra.mxu1 %v3371_v3  ;;  %v4363_v3 = vld [vmem:[%s4592_s28 + $0x5bc] sm:$0xf]  ;;  %v3198_v29 = vld [vmem:[%s4592_s28 + $0x140] sm:$0xf] }
  0xf3   : > { %2393 = vmatpush.bf16.msra.mxu2 %v3659_v4  ;;  %v3768_v4 = vld [vmem:[%s4592_s28 + $0x5dc] sm:$0xf0] }
  0xf4   : > { %2406 = vmatpush.bf16.msra.mxu3 %v3947_v9  ;;  %v3483_v9 = vor.u32 %v4291_v0, %v3480_v2  ;;  %v3771_v10 = vor.u32 %v4363_v3, %v3768_v4  ;;  %v3336_v0 = vld [vmem:[%s4592_s28 + $0x27c] sm:$0xf0]  ;;  %v3951_v3 = vor.u32 %v4408_v15, %v3948_v58  ;;  %v4098_v15 = vld [vmem:[%s4592_s28 + $0x848] sm:$0xf]  ;;  %v4449_v58 = vld [vmem:[%s4592_s28 + $0x868] sm:$0xf0] }
  0xf5   : > { %2368 = vmatpush.bf16.msra.mxu0 %v3047_v22  ;;  %v5134_v8 = vpop.f32.mrf.mxu0  ;;  %v4354_v22 = vld [vmem:[%s4592_s28 + $0x574] sm:$0xf]  ;;  %v3624_v4 = vld [vmem:[%s4592_s28 + $0x4bc] sm:$0xf0] }
  0xf6   : > { %2381 = vmatpush.bf16.msra.mxu1 %v3335_v31  ;;  %v5139_v16 = vpop.f32.mrf.mxu1  ;;  %v3159_v31 = vor.u32 %v4210_v11, %v3156_v12  ;;  %v3735_v33 = vor.u32 %v4354_v22, %v3732_v27  ;;  %v3594_v11 = vld [vmem:[%s4592_s28 + $0x458] sm:$0xf]  ;;  %v3339_v22 = vor.u32 %v4255_v63, %v3336_v0  ;;  %v4440_v63 = vld [vmem:[%s4592_s28 + $0x820] sm:$0xf0] }
  0xf7   : > { %2394 = vmatpush.bf16.msra.mxu2 %v3623_v32  ;;  %v3447_v32 = vor.u32 %v4282_v13, %v3444_v21  ;;  %v4323_v13 = vld [vmem:[%s4592_s28 + $0x478] sm:$0xf0] }
  0xf8   : > { %2407 = vmatpush.bf16.msra.mxu3 %v3911_v36  ;;  %2369 = vmatmul.bf16.vlgmr.msra.gmra.mxu0 %v4974_v24  ;;  %v3120_v36 = vld [vmem:[%s4592_s28 + $0xcc] sm:$0xf0]  ;;  %v4395_v21 = vld [vmem:[%s4592_s28 + $0x6b8] sm:$0xf0] }
  0xf9   : > { %2413 = vmatpush.bf16.msrb.mxu0 %v3303_v37  ;;  %2382 = vmatmul.bf16.vlgmr.msra.gmra.mxu1 %v4977_v26  ;;  %v4273_v37 = vld [vmem:[%s4592_s28 + $0x2ec] sm:$0xf]  ;;  %v3123_v47 = vor.u32 %v4201_v34, %v3120_v36  ;;  %v3270_v36 = vld [vmem:[%s4592_s28 + $0x1d0] sm:$0xf] }
  0xfa   : > { %2426 = vmatpush.bf16.msrb.mxu1 %v3591_v38  ;;  %2395 = vmatmul.bf16.vlgmr.msra.gmra.mxu2 %v4966_v20  ;;  %v3411_v50 = vor.u32 %v4273_v37, %v3408_v40  ;;  %v4242_v37 = vld [vmem:[%s4592_s28 + $0x1f0] sm:$0xf0] }
  0xfb   : > { %2439 = vmatpush.bf16.msrb.mxu2 %v3879_v39  ;;  %2408 = vmatmul.bf16.vlgmr.msra.gmra.mxu3 %v4971_v23  ;;  %v4023_v39 = vor.u32 %v4426_v28, %v4020_v30  ;;  %v4170_v28 = vld [vmem:[%s4592_s28 + $0x8d8] sm:$0xf]  ;;  %v4467_v30 = vld [vmem:[%s4592_s28 + $0x8f8] sm:$0xf0] }
  0xfc   : > { %2452 = vmatpush.bf16.msrb.mxu3 %v4167_v44  ;;  %v4171_v40 = vor.u32 %v4467_v30, %v4170_v28 }
  0xfd   : > { %2414 = vmatpush.bf16.msrb.mxu0 %v3267_v51  ;;  %v5149_v38 = vpop.f32.mrf.mxu2  ;;  %v2164_v49 = vpop.f32.mrf.mxu0  ;;  %v3699_v51 = vor.u32 %v4345_v41, %v3696_v42  ;;  %v4314_v41 = vld [vmem:[%s4592_s28 + $0x430] sm:$0xf0]  ;;  %v3846_v42 = vld [vmem:[%s4592_s28 + $0x650] sm:$0xf] }
  0xfe   : > { %2427 = vmatpush.bf16.msrb.mxu1 %v3555_v52  ;;  %v5154_v44 = vpop.f32.mrf.mxu3  ;;  %v4192_v52 = vld [vmem:[%s4592_s28 + $0x64] sm:$0xf]  ;;  %v2177_v54 = vpop.f32.mrf.mxu1  ;;  %v3271_v49 = vor.u32 %v4242_v37, %v3270_v36 }
  0xff   : > { %2440 = vmatpush.bf16.msrb.mxu2 %v3843_v53  ;;  %v3084_v53 = vld [vmem:[%s4592_s28 + $0x84] sm:$0xf0] }
 0x100   : > { %2453 = vmatpush.bf16.msrb.mxu3 %v4131_v56  ;;  %v3372_v56 = vld [vmem:[%s4592_s28 + $0x2c4] sm:$0xf0]  ;;  %v3087_v59 = vor.u32 %v4192_v52, %v3084_v53  ;;  %v4233_v53 = vld [vmem:[%s4592_s28 + $0x1a8] sm:$0xf0] }
 0x101   : > { %2415 = vmatpush.bf16.msrb.mxu0 %v3231_v60  ;;  %v4183_v60 = vld [vmem:[%s4592_s28 + $0x1c] sm:$0xf]  ;;  %v3234_v52 = vld [vmem:[%s4592_s28 + $0x188] sm:$0xf] }
 0x102   : > { %2428 = vmatpush.bf16.msrb.mxu1 %v3519_v18  ;;  %v3048_v18 = vld [vmem:[%s4592_s28 + $0x3c] sm:$0xf0] }
 0x103   : > { %2441 = vmatpush.bf16.msrb.mxu2 %v3807_v61  ;;  %v3375_v61 = vor.u32 %v4264_v14, %v3372_v56  ;;  %v3051_v12 = vor.u32 %v4183_v60, %v3048_v18  ;;  %v3522_v14 = vld [vmem:[%s4592_s28 + $0x3c8] sm:$0xf]  ;;  %v3486_v60 = vld [vmem:[%s4592_s28 + $0x380] sm:$0xf]  ;;  %v4099_v18 = vor.u32 %v4449_v58, %v4098_v15  ;;  %v4341_v58 = vld [vmem:[%s4592_s28 + $0x508] sm:$0xf0] }
 0x104   : > { %2454 = vmatpush.bf16.msrb.mxu3 %v4095_v1  ;;  %v4327_v1 = vld [vmem:[%s4592_s28 + $0x49c] sm:$0xf]  ;;  %v3810_v56 = vld [vmem:[%s4592_s28 + $0x608] sm:$0xf] }
 0x105   : > { %2416 = vmatpush.bf16.msrb.mxu0 %v3195_v7  ;;  %v2190_v2 = vpop.f32.mrf.mxu2  ;;  %v3627_v27 = vor.u32 %v4327_v1, %v3624_v4  ;;  %v3666_v15 = vld [vmem:[%s4592_s28 + $0x4e8] sm:$0xf] }
 0x106   : > { %2429 = vmatpush.bf16.msrb.mxu1 %v3483_v9  ;;  %v2203_v7 = vpop.f32.mrf.mxu3  ;;  %v3306_v9 = vld [vmem:[%s4592_s28 + $0x218] sm:$0xf] }
 0x107   : > { %2442 = vmatpush.bf16.msrb.mxu2 %v3771_v10  ;;  %v4251_v10 = vld [vmem:[%s4592_s28 + $0x238] sm:$0xf0] }
 0x108   : > { %2455 = vmatpush.bf16.msrb.mxu3 %v4059_v19  ;;  %v3882_v19 = vld [vmem:[%s4592_s28 + $0x698] sm:$0xf]  ;;  %v4215_v7 = vld [vmem:[%s4592_s28 + $0x118] sm:$0xf0] }
 0x109   : > { %2417 = vmatpush.bf16.msrb.mxu0 %v3159_v31  ;;  %v3915_v31 = vor.u32 %v4399_v5, %v3912_v6  ;;  %v3883_v34 = vor.u32 %v4395_v21, %v3882_v19  ;;  %v3162_v6 = vld [vmem:[%s4592_s28 + $0xf8] sm:$0xf]  ;;  %v4431_v21 = vld [vmem:[%s4592_s28 + $0x7d8] sm:$0xf0] }
 0x10a   : > { %2430 = vmatpush.bf16.msrb.mxu1 %v3447_v32  ;;  %v3307_v32 = vor.u32 %v4251_v10, %v3306_v9  ;;  %v4026_v19 = vld [vmem:[%s4592_s28 + $0x7b8] sm:$0xf] }
 0x10b   : > { %2443 = vmatpush.bf16.msrb.mxu2 %v3735_v33  ;;  %v3595_v33 = vor.u32 %v4323_v13, %v3594_v11  ;;  %v3738_v11 = vld [vmem:[%s4592_s28 + $0x578] sm:$0xf] }
 0x10c   : > { %2456 = vmatpush.bf16.msrb.mxu3 %v4023_v39  ;;  %v3558_v39 = vld [vmem:[%s4592_s28 + $0x410] sm:$0xf] }
 0x10d   : > { %2418 = vmatpush.bf16.msrb.mxu0 %v3123_v47  ;;  %v4458_v47 = vld [vmem:[%s4592_s28 + $0x8b0] sm:$0xf0] }
 0x10e   : > { %2431 = vmatpush.bf16.msrb.mxu1 %v3411_v50  ;;  %v3559_v50 = vor.u32 %v4314_v41, %v3558_v39  ;;  %v4135_v54 = vor.u32 %v4458_v47, %v4134_v46  ;;  %v3702_v39 = vld [vmem:[%s4592_s28 + $0x530] sm:$0xf] }
 0x10f   : > { %2444 = vmatpush.bf16.msrb.mxu2 %v3699_v51  ;;  %v3847_v51 = vor.u32 %v4386_v45, %v3846_v42  ;;  %v3990_v42 = vld [vmem:[%s4592_s28 + $0x770] sm:$0xf]  ;;  %v4422_v45 = vld [vmem:[%s4592_s28 + $0x790] sm:$0xf0] }
 0x110   : > { %2457 = vmatpush.bf16.msrb.mxu3 %v3987_v55  ;;  %v4305_v55 = vld [vmem:[%s4592_s28 + $0x3e8] sm:$0xf0] }
 0x111   : > { %2419 = vmatpush.bf16.msrb.mxu0 %v3087_v59  ;;  %v3235_v59 = vor.u32 %v4233_v53, %v3234_v52  ;;  %v3523_v25 = vor.u32 %v4305_v55, %v3522_v14  ;;  %v4197_v14 = vld [vmem:[%s4592_s28 + $0x88] sm:$0xf0] }
 0x112   : > { %2432 = vmatpush.bf16.msrb.mxu1 %v3375_v61  ;;  %v4296_v61 = vld [vmem:[%s4592_s28 + $0x3a0] sm:$0xf0]  ;;  %v4269_v55 = vld [vmem:[%s4592_s28 + $0x2c8] sm:$0xf0] }
 0x113   : > { %2445 = vmatpush.bf16.msrb.mxu2 %v3663_v62  ;;  %v3774_v62 = vld [vmem:[%s4592_s28 + $0x5c0] sm:$0xf] }
 0x114   : > { %2458 = vmatpush.bf16.msrb.mxu3 %v3951_v3  ;;  %v3487_v3 = vor.u32 %v4296_v61, %v3486_v60  ;;  %v3667_v61 = vor.u32 %v4341_v58, %v3666_v15 }
 0x115   : > { %2420 = vmatpush.bf16.msrb.mxu0 %v3051_v12  ;;  %v2214_v2 = vpop.f32.mrf.mxu0  ;;  %v4359_v12 = vld [vmem:[%s4592_s28 + $0x598] sm:$0xf0] }
 0x116   : > { %2433 = vmatpush.bf16.msrb.mxu1 %v3339_v22  ;;  %v2227_v5 = vpop.f32.mrf.mxu1  ;;  %v3739_v30 = vor.u32 %v4359_v12, %v3738_v11  ;;  %v4491_v11 = vld [vmem:[#allocation1 + $0x12] sm:$0xff]  ;;  %v4492_v12 = vld [vmem:[#allocation1 + $0x1b] sm:$0xff] }
 0x117   : > { %2446 = vmatpush.bf16.msrb.mxu2 %v3627_v27  ;;  %v2228_v10 = vadd.f32 %v2227_v5, %v2214_v2  ;;  %v3163_v27 = vor.u32 %v4215_v7, %v3162_v6  ;;  %v4332_v2 = vld [vmem:[%s4592_s28 + $0x4c0] sm:$0xf0] }
 0x118   : > { %2459 = vmatpush.bf16.msrb.mxu3 %v3915_v31  ;;  %2421 = vmatmul.bf16.vlgmr.msrb.gmra.mxu0 %v4974_v24  ;;  %v4224_v24 = vld [vmem:[%s4592_s28 + $0x160] sm:$0xf0] }
 0x119   : > { %2465 = vmatpush.bf16.msra.mxu0 %v3307_v32  ;;  %2434 = vmatmul.bf16.vlgmr.msrb.gmra.mxu1 %v4977_v26  ;;  %v4062_v26 = vld [vmem:[%s4592_s28 + $0x800] sm:$0xf]  ;;  %v3199_v1 = vor.u32 %v4224_v24, %v3198_v29  ;;  %v3126_v32 = vld [vmem:[%s4592_s28 + $0xb0] sm:$0xf]  ;;  %v4404_v5 = vld [vmem:[%s4592_s28 + $0x700] sm:$0xf0] }
 0x11a   : > { %2478 = vmatpush.bf16.msra.mxu1 %v3595_v33  ;;  %2447 = vmatmul.bf16.vlgmr.msrb.gmra.mxu2 %v4966_v20  ;;  %v2176_v20 = vadd.f32 %v5139_v16, %v5134_v8  ;;  %v4368_v8 = vld [vmem:[%s4592_s28 + $0x5e0] sm:$0xf0]  ;;  %v2137_v16 = vadd.f32 %v5070_v43, %v2124_v57  ;;  %v3450_v43 = vld [vmem:[%s4592_s28 + $0x338] sm:$0xf]  ;;  %v4063_v9 = vor.u32 %v4440_v63, %v4062_v26  ;;  %v4206_v33 = vld [vmem:[%s4592_s28 + $0xd0] sm:$0xf0] }
 0x11b   : > { %2491 = vmatpush.bf16.msra.mxu2 %v3883_v34  ;;  %2460 = vmatmul.bf16.vlgmr.msrb.gmra.mxu3 %v4971_v23  ;;  %v3811_v23 = vor.u32 %v4377_v17, %v3810_v56  ;;  %v3775_v4 = vor.u32 %v4368_v8, %v3774_v62  ;;  %v3414_v34 = vld [vmem:[%s4592_s28 + $0x2f0] sm:$0xf]  ;;  %v3991_v57 = vor.u32 %v4422_v45, %v3990_v42  ;;  %v3054_v62 = vld [vmem:[%s4592_s28 + $0x20] sm:$0xf]  ;;  %v4188_v8 = vld [vmem:[%s4592_s28 + $0x40] sm:$0xf0] }
 0x11c   : > { %2504 = vmatpush.bf16.msra.mxu3 %v4171_v40  ;;  %v2189_v0 = vadd.f32 %v5149_v38, %v2176_v20  ;;  %v4287_v38 = vld [vmem:[%s4592_s28 + $0x358] sm:$0xf0]  ;;  %v2150_v13 = vadd.f32 %v5075_v48, %v2137_v16  ;;  %v4027_v48 = vor.u32 %v4431_v21, %v4026_v19  ;;  %v4350_v40 = vld [vmem:[%s4592_s28 + $0x550] sm:$0xf0]  ;;  %v243_v20 = vld [vmem:[#allocation2] sm:$0xff]  ;;  %v3055_v6 = vor.u32 %v4188_v8, %v3054_v62 }
 0x11d   : > { %2466 = vmatpush.bf16.msra.mxu0 %v3271_v49  ;;  %v3451_v28 = vor.u32 %v4287_v38, %v3450_v43  ;;  %v2240_v31 = vpop.f32.mrf.mxu2  ;;  %v3127_v49 = vor.u32 %v4206_v33, %v3126_v32  ;;  %v3703_v53 = vor.u32 %v4350_v40, %v3702_v39  ;;  %v3342_v16 = vld [vmem:[%s4592_s28 + $0x260] sm:$0xf]  ;;  %v4490_v38 = vld [vmem:[#allocation1 + $0x9] sm:$0xff] }
 0x11e   : > { %2479 = vmatpush.bf16.msra.mxu1 %v3559_v50  ;;  %v2202_v22 = vadd.f32 %v5154_v44, %v2189_v0  ;;  %v2241_v36 = vadd.f32 %v2240_v31, %v2228_v10  ;;  %v2253_v37 = vpop.f32.mrf.mxu3  ;;  %v4278_v44 = vld [vmem:[%s4592_s28 + $0x310] sm:$0xf0]  ;;  %v2525_v41 = vrot.slane %v2150_v13, 6  ;;  %v3090_v50 = vld [vmem:[%s4592_s28 + $0x68] sm:$0xf]  ;;  %v2229_v56 = vpop.f32.mrf.mxu1  ;;  %v4489_v10 = vld [vmem:[#allocation1] sm:$0xff] }
 0x11f   : > { %2492 = vmatpush.bf16.msra.mxu2 %v3847_v51  ;;  %v2216_v51 = vpop.f32.mrf.mxu0  ;;  %v3415_v52 = vor.u32 %v4278_v44, %v3414_v34  ;;  %v3091_v24 = vor.u32 %v4197_v14, %v3090_v50  ;;  %v4260_v0 = vld [vmem:[%s4592_s28 + $0x280] sm:$0xf0]  ;;  %v244_v8 = vld [vmem:[#allocation2 + $0x8] sm:$0xff] }
 0x120   : > { %2505 = vmatpush.bf16.msra.mxu3 %v4135_v54  ;;  %v2526_v46 = vrot.slane %v2202_v22, 4  ;;  %v2254_v47 = vadd.f32 %v2253_v37, %v2241_v36  ;;  %v3378_v54 = vld [vmem:[%s4592_s28 + $0x2a8] sm:$0xf]  ;;  %v3343_v7 = vor.u32 %v4260_v0, %v3342_v16 }
 0x121   : > { %2467 = vmatpush.bf16.msra.mxu0 %v3235_v59  ;;  %v3954_v59 = vld [vmem:[%s4592_s28 + $0x728] sm:$0xf] }
 0x122   : > { %2480 = vmatpush.bf16.msra.mxu1 %v3523_v25  ;;  %v2527_v17 = vrot.slane %v2254_v47, 2  ;;  %v4413_v25 = vld [vmem:[%s4592_s28 + $0x748] sm:$0xf0] }
 0x123   : > { %2493 = vmatpush.bf16.msra.mxu2 %v3811_v23  ;;  %v2532_v23 = vsel %vm2531_vm1, %v5023_v35, %v2525_v41  ;;  %v3955_v63 = vor.u32 %v4413_v25, %v3954_v59 }
 0x124   : > { %2506 = vmatpush.bf16.msra.mxu3 %v4099_v18  ;;  %v2534_v29 = vsel %vm2533_vm2, %v2526_v46, %v2527_v17  ;;  %v3379_v18 = vor.u32 %v4269_v55, %v3378_v54 }
 0x125   : > { %2468 = vmatpush.bf16.msra.mxu0 %v3199_v1  ;;  %v2536_v60 = vsel %vm2535_vm3, %v2532_v23, %v2534_v29  ;;  %v2242_v26 = vpop.f32.mrf.mxu2  ;;  %v3630_v1 = vld [vmem:[%s4592_s28 + $0x4a0] sm:$0xf] }
 0x126   : > { %2481 = vmatpush.bf16.msra.mxu1 %v3487_v3  ;;  %v2542_v35 = vadd.f32 %v2536_v60, %v243_v20  ;;  %v2255_v3 = vpop.f32.mrf.mxu3  ;;  %v3631_v43 = vor.u32 %v4332_v2, %v3630_v1 }
 0x127   : > { %2494 = vmatpush.bf16.msra.mxu2 %v3775_v4  ;;  %v3918_v4 = vld [vmem:[%s4592_s28 + $0x6e0] sm:$0xf] }
 0x128   : > { %2507 = vmatpush.bf16.msra.mxu3 %v4063_v9  ;;  %2545 = vst [vmem:[#allocation2] sm:$0xff] %v2542_v35  ;;  %v3919_v9 = vor.u32 %v4404_v5, %v3918_v4 }
 0x129   : > { %2469 = vmatpush.bf16.msra.mxu0 %v3163_v27 }
 0x12a   : > { %2482 = vmatpush.bf16.msra.mxu1 %v3451_v28 }
 0x12b   : > { %2495 = vmatpush.bf16.msra.mxu2 %v3739_v30 }
 0x12c   : > { %2508 = vmatpush.bf16.msra.mxu3 %v4027_v48 }
 0x12d   : > { %2470 = vmatpush.bf16.msra.mxu0 %v3127_v49 }
 0x12e   : > { %2483 = vmatpush.bf16.msra.mxu1 %v3415_v52 }
 0x12f   : > { %2496 = vmatpush.bf16.msra.mxu2 %v3703_v53 }
 0x130   : > { %2509 = vmatpush.bf16.msra.mxu3 %v3991_v57 }
 0x131   : > { %2471 = vmatpush.bf16.msra.mxu0 %v3091_v24 }
 0x132   : > { %2484 = vmatpush.bf16.msra.mxu1 %v3379_v18 }
 0x133   : > { %2497 = vmatpush.bf16.msra.mxu2 %v3667_v61 }
 0x134   : > { %2510 = vmatpush.bf16.msra.mxu3 %v3955_v63 }
 0x135   : > { %2472 = vmatpush.bf16.msra.mxu0 %v3055_v6  ;;  %v2266_v13 = vpop.f32.mrf.mxu0 }
 0x136   : > { %2485 = vmatpush.bf16.msra.mxu1 %v3343_v7  ;;  %v2279_v19 = vpop.f32.mrf.mxu1 }
 0x137   : > { %2498 = vmatpush.bf16.msra.mxu2 %v3631_v43  ;;  %v2280_v21 = vadd.f32 %v2279_v19, %v2266_v13 }
 0x138   : > { %2511 = vmatpush.bf16.msra.mxu3 %v3919_v9  ;;  %2473 = vmatmul.bf16.vlgmr.msra.gmra.mxu0 %v4489_v10  ;;  %v245_v9 = vld [vmem:[#allocation2 + $0x10] sm:$0x3] }
 0x139   : > { %2486 = vmatmul.bf16.vlgmr.msra.gmra.mxu1 %v4490_v38 }
 0x13a   : > { %2499 = vmatmul.bf16.vlgmr.msra.gmra.mxu2 %v4491_v11 }
 0x13b   : > { %2512 = vmatmul.bf16.vlgmr.msra.gmra.mxu3 %v4492_v12 }
 0x13d   : > { %v2292_v22 = vpop.f32.mrf.mxu2  ;;  %v2268_v31 = vpop.f32.mrf.mxu0 }
 0x13e   : > { %v2293_v27 = vadd.f32 %v2292_v22, %v2280_v21  ;;  %v2305_v28 = vpop.f32.mrf.mxu3  ;;  %v2281_v32 = vpop.f32.mrf.mxu1 }
 0x140   : > { %v2306_v30 = vadd.f32 %v2305_v28, %v2293_v27 }
 0x145   : > { %v2294_v33 = vpop.f32.mrf.mxu2 }
 0x146   : > { %v2307_v34 = vpop.f32.mrf.mxu3 }
 0x155   : > { %v2318_v48 = vpop.f32.mrf.mxu0 }
 0x156   : > { %v2331_v36 = vpop.f32.mrf.mxu1 }
 0x157   : > { %v2332_v14 = vadd.f32 %v2331_v36, %v2318_v48 }
 0x15d   : > { %v2344_v37 = vpop.f32.mrf.mxu2  ;;  %v2320_v39 = vpop.f32.mrf.mxu0 }
 0x15e   : > { %v2357_v44 = vpop.f32.mrf.mxu3  ;;  %v2333_v40 = vpop.f32.mrf.mxu1  ;;  %v2345_v55 = vadd.f32 %v2344_v37, %v2332_v14 }
 0x160   : > { %v2358_v58 = vadd.f32 %v2357_v44, %v2345_v55 }
 0x162   : > { %v2528_v29 = vrot.slane %v2358_v58, 6 }
 0x164   : > { %v2537_v16 = vsel %vm2531_vm1, %v2306_v30, %v2528_v29 }
 0x165   : > { %v2346_v41 = vpop.f32.mrf.mxu2 }
 0x166   : > { %v2359_v42 = vpop.f32.mrf.mxu3 }
 0x175   : > { %v2370_v45 = vpop.f32.mrf.mxu0 }
 0x176   : > { %v2383_v46 = vpop.f32.mrf.mxu1 }
 0x177   : > { %v2384_v54 = vadd.f32 %v2383_v46, %v2370_v45 }
 0x17d   : > { %v2396_v47 = vpop.f32.mrf.mxu2  ;;  %v2372_v50 = vpop.f32.mrf.mxu0 }
 0x17e   : > { %v2409_v49 = vpop.f32.mrf.mxu3  ;;  %v2385_v51 = vpop.f32.mrf.mxu1  ;;  %v2397_v57 = vadd.f32 %v2396_v47, %v2384_v54 }
 0x180   : > { %v2410_v59 = vadd.f32 %v2409_v49, %v2397_v57 }
 0x182   : > { %v2529_v61 = vrot.slane %v2410_v59, 4 }
 0x185   : > { %v2398_v52 = vpop.f32.mrf.mxu2 }
 0x186   : > { %v2411_v53 = vpop.f32.mrf.mxu3 }
 0x195   : > { %v2422_v56 = vpop.f32.mrf.mxu0 }
 0x196   : > { %v2435_v17 = vpop.f32.mrf.mxu1 }
 0x197   : > { %v2436_v15 = vadd.f32 %v2435_v17, %v2422_v56 }
 0x19d   : > { %v2448_v20 = vpop.f32.mrf.mxu2  ;;  %v2424_v60 = vpop.f32.mrf.mxu0 }
 0x19e   : > { %v2449_v25 = vadd.f32 %v2448_v20, %v2436_v15  ;;  %v2461_v23 = vpop.f32.mrf.mxu3  ;;  %v2437_v18 = vpop.f32.mrf.mxu1 }
 0x1a0   : > { %v2462_v24 = vadd.f32 %v2461_v23, %v2449_v25 }
 0x1a2   : > { %v2530_v62 = vrot.slane %v2462_v24, 2 }
 0x1a4   : > { %v2538_v26 = vsel %vm2533_vm2, %v2529_v61, %v2530_v62 }
 0x1a5   : > { %v2539_v35 = vsel %vm2535_vm3, %v2537_v16, %v2538_v26  ;;  %v2450_v63 = vpop.f32.mrf.mxu2 }
 0x1a6   : > { %v2543_v0 = vadd.f32 %v2539_v35, %v244_v8  ;;  %v2463_v1 = vpop.f32.mrf.mxu3 }
 0x1a8   : > { %2546 = vst [vmem:[#allocation2 + $0x8] sm:$0xff] %v2543_v0 }
 0x1b5   : > { %v2474_v2 = vpop.f32.mrf.mxu0 }
 0x1b6   : > { %v2487_v3 = vpop.f32.mrf.mxu1 }
 0x1b7   : > { %v2488_v4 = vadd.f32 %v2487_v3, %v2474_v2 }
 0x1bd   : > { %v2500_v5 = vpop.f32.mrf.mxu2  ;;  %v2476_v43 = vpop.f32.mrf.mxu0 }
 0x1be   : > { %v2501_v6 = vadd.f32 %v2500_v5, %v2488_v4  ;;  %v2513_v7 = vpop.f32.mrf.mxu3  ;;  %v2489_v10 = vpop.f32.mrf.mxu1 }
 0x1c0   : > { %v2514_v38 = vadd.f32 %v2513_v7, %v2501_v6 }
 0x1c2   : > { %v2544_v11 = vadd.f32 %v2514_v38, %v245_v9  ;;  %2552 = sbr.rel (%p4172_p6) target bundleno = 688 (0x2b0), region = 48 }
 0x1c4   : > { %2548 = vst.msk [vmem:[#allocation2 + $0x10] sm:$0x3] %vm2547_vm4, %v2544_v11 }
 0x1c5   : > { %v2502_v12 = vpop.f32.mrf.mxu2 }
 0x1c6   : > { %v2515_v13 = vpop.f32.mrf.mxu3 }
 0x1c7   : > { %v2637_v19 = vld [vmem:[%s5670_s3 + $0x178] sm:$0xff]  ;;  %v2636_v22 = vld [vmem:[%s5670_s3 + $0x170] sm:$0xff]  ;;  %v2635_v31 = vld [vmem:[%s5670_s3 + $0x168] sm:$0xff]  ;;  %vm2750_vm5 = vcmask 1044480   ;;  %vm2747_vm6 = vcmask 39936   ;;  %vm2953_vm10 = vcmask 9216  }
 0x1c8   : > { %v2605_v21 = vld [vmem:[%s5670_s3 + $0x78] sm:$0xff]  ;;  %2794 = vmatpush.msra.mxu2 %v2637_v19  ;;  %v2604_v28 = vld [vmem:[%s5670_s3 + $0x70] sm:$0xff]  ;;  %v2603_v33 = vld [vmem:[%s5670_s3 + $0x68] sm:$0xff] }
 0x1c9   : > { %2754 = vmatpush.msra.mxu0 %v2605_v21  ;;  %v2653_v27 = vld [vmem:[%s5670_s3 + $0x1f8] sm:$0xff]  ;;  %v2652_v32 = vld [vmem:[%s5670_s3 + $0x1f0] sm:$0xff]  ;;  %v2651_v48 = vld [vmem:[%s5670_s3 + $0x1e8] sm:$0xff] }
 0x1ca   : > { %v2621_v30 = vld [vmem:[%s5670_s3 + $0xf8] sm:$0xff]  ;;  %2814 = vmatpush.msra.mxu3 %v2653_v27  ;;  %2795 = vmatpush.msra.mxu2 %v2636_v22  ;;  %v2620_v34 = vld [vmem:[%s5670_s3 + $0xf0] sm:$0xff]  ;;  %v2634_v36 = vld [vmem:[%s5670_s3 + $0x160] sm:$0xff] }
 0x1cb   : > { %2774 = vmatpush.msra.mxu1 %v2621_v30  ;;  %2755 = vmatpush.msra.mxu0 %v2604_v28  ;;  %v2602_v37 = vld [vmem:[%s5670_s3 + $0x60] sm:$0xff]  ;;  %v2619_v44 = vld [vmem:[%s5670_s3 + $0xe8] sm:$0xff]  ;;  %v2633_v41 = vld [vmem:[%s5670_s3 + $0x158] sm:$0xff] }
 0x1cc   : > { %2815 = vmatpush.msra.mxu3 %v2652_v32  ;;  %2796 = vmatpush.msra.mxu2 %v2635_v31  ;;  %v2650_v39 = vld [vmem:[%s5670_s3 + $0x1e0] sm:$0xff]  ;;  %v2601_v42 = vld [vmem:[%s5670_s3 + $0x58] sm:$0xff]  ;;  %v2632_v47 = vld [vmem:[%s5670_s3 + $0x150] sm:$0xff] }
 0x1cd   : > { %2775 = vmatpush.msra.mxu1 %v2620_v34  ;;  %2756 = vmatpush.msra.mxu0 %v2603_v33  ;;  %v2618_v40 = vld [vmem:[%s5670_s3 + $0xe0] sm:$0xff]  ;;  %v2649_v45 = vld [vmem:[%s5670_s3 + $0x1d8] sm:$0xff]  ;;  %v2600_v49 = vld [vmem:[%s5670_s3 + $0x50] sm:$0xff] }
 0x1ce   : > { %2816 = vmatpush.msra.mxu3 %v2651_v48  ;;  %2797 = vmatpush.msra.mxu2 %v2634_v36  ;;  %v2617_v46 = vld [vmem:[%s5670_s3 + $0xd8] sm:$0xff]  ;;  %v2648_v50 = vld [vmem:[%s5670_s3 + $0x1d0] sm:$0xff]  ;;  %v2631_v52 = vld [vmem:[%s5670_s3 + $0x148] sm:$0xff] }
 0x1cf   : > { %2776 = vmatpush.msra.mxu1 %v2619_v44  ;;  %2757 = vmatpush.msra.mxu0 %v2602_v37  ;;  %v2616_v51 = vld [vmem:[%s5670_s3 + $0xd0] sm:$0xff]  ;;  %v2599_v53 = vld [vmem:[%s5670_s3 + $0x48] sm:$0xff]  ;;  %v2630_v55 = vld [vmem:[%s5670_s3 + $0x140] sm:$0xff] }
 0x1d0   : > { %2817 = vmatpush.msra.mxu3 %v2650_v39  ;;  %2798 = vmatpush.msra.mxu2 %v2633_v41  ;;  %v2647_v14 = vld [vmem:[%s5670_s3 + $0x1c8] sm:$0xff]  ;;  %v2598_v56 = vld [vmem:[%s5670_s3 + $0x40] sm:$0xff]  ;;  %v2629_v15 = vld [vmem:[%s5670_s3 + $0x138] sm:$0xff] }
 0x1d1   : > { %2777 = vmatpush.msra.mxu1 %v2618_v40  ;;  %2758 = vmatpush.msra.mxu0 %v2601_v42  ;;  %v2615_v54 = vld [vmem:[%s5670_s3 + $0xc8] sm:$0xff]  ;;  %v2646_v17 = vld [vmem:[%s5670_s3 + $0x1c0] sm:$0xff]  ;;  %v2597_v58 = vld [vmem:[%s5670_s3 + $0x38] sm:$0xff] }
 0x1d2   : > { %2818 = vmatpush.msra.mxu3 %v2649_v45  ;;  %2799 = vmatpush.msra.mxu2 %v2632_v47  ;;  %v2614_v57 = vld [vmem:[%s5670_s3 + $0xc0] sm:$0xff]  ;;  %v2645_v20 = vld [vmem:[%s5670_s3 + $0x1b8] sm:$0xff]  ;;  %v2628_v25 = vld [vmem:[%s5670_s3 + $0x130] sm:$0xff] }
 0x1d3   : > { %2778 = vmatpush.msra.mxu1 %v2617_v46  ;;  %2759 = vmatpush.msra.mxu0 %v2600_v49  ;;  %v2613_v59 = vld [vmem:[%s5670_s3 + $0xb8] sm:$0xff]  ;;  %v2596_v23 = vld [vmem:[%s5670_s3 + $0x30] sm:$0xff]  ;;  %v2627_v60 = vld [vmem:[%s5670_s3 + $0x128] sm:$0xff] }
 0x1d4   : > { %2819 = vmatpush.msra.mxu3 %v2648_v50  ;;  %2800 = vmatpush.msra.mxu2 %v2631_v52  ;;  %v2644_v29 = vld [vmem:[%s5670_s3 + $0x1b0] sm:$0xff]  ;;  %v2595_v18 = vld [vmem:[%s5670_s3 + $0x28] sm:$0xff]  ;;  %v2626_v8 = vld [vmem:[%s5670_s3 + $0x120] sm:$0xff] }
 0x1d5   : > { %2779 = vmatpush.msra.mxu1 %v2616_v51  ;;  %2760 = vmatpush.msra.mxu0 %v2599_v53  ;;  %v2612_v24 = vld [vmem:[%s5670_s3 + $0xb0] sm:$0xff]  ;;  %v2643_v61 = vld [vmem:[%s5670_s3 + $0x1a8] sm:$0xff]  ;;  %v2594_v16 = vld [vmem:[%s5670_s3 + $0x20] sm:$0xff] }
 0x1d6   : > { %2820 = vmatpush.msra.mxu3 %v2647_v14  ;;  %2801 = vmatpush.msra.mxu2 %v2630_v55  ;;  %v2611_v62 = vld [vmem:[%s5670_s3 + $0xa8] sm:$0xff]  ;;  %v2642_v26 = vld [vmem:[%s5670_s3 + $0x1a0] sm:$0xff]  ;;  %v2625_v63 = vld [vmem:[%s5670_s3 + $0x118] sm:$0xff] }
 0x1d7   : > { %2780 = vmatpush.msra.mxu1 %v2615_v54  ;;  %2761 = vmatpush.msra.mxu0 %v2598_v56  ;;  %v2610_v35 = vld [vmem:[%s5670_s3 + $0xa0] sm:$0xff]  ;;  %v2593_v0 = vld [vmem:[%s5670_s3 + $0x18] sm:$0xff]  ;;  %v2624_v3 = vld [vmem:[%s5670_s3 + $0x110] sm:$0xff] }
 0x1d8   : > { %2821 = vmatpush.msra.mxu3 %v2646_v17  ;;  %2802 = vmatpush.msra.mxu2 %v2629_v15  ;;  %v2641_v1 = vld [vmem:[%s5670_s3 + $0x198] sm:$0xff]  ;;  %v2592_v4 = vld [vmem:[%s5670_s3 + $0x10] sm:$0xff]  ;;  %v2623_v7 = vld [vmem:[%s5670_s3 + $0x108] sm:$0xff] }
 0x1d9   : > { %2781 = vmatpush.msra.mxu1 %v2614_v57  ;;  %2762 = vmatpush.msra.mxu0 %v2597_v58  ;;  %v2609_v2 = vld [vmem:[%s5670_s3 + $0x98] sm:$0xff]  ;;  %v2640_v5 = vld [vmem:[%s5670_s3 + $0x190] sm:$0xff]  ;;  %v2591_v43 = vld [vmem:[%s5670_s3 + $0x8] sm:$0xff] }
 0x1da   : > { %2822 = vmatpush.msra.mxu3 %v2645_v20  ;;  %2803 = vmatpush.msra.mxu2 %v2628_v25  ;;  %v2608_v6 = vld [vmem:[%s5670_s3 + $0x90] sm:$0xff]  ;;  %v2639_v9 = vld [vmem:[%s5670_s3 + $0x188] sm:$0xff]  ;;  %v2622_v38 = vld [vmem:[%s5670_s3 + $0x100] sm:$0xff] }
 0x1db   : > { %2782 = vmatpush.msra.mxu1 %v2613_v59  ;;  %2763 = vmatpush.msra.mxu0 %v2596_v23  ;;  %v2607_v10 = vld [vmem:[%s5670_s3 + $0x88] sm:$0xff]  ;;  %v2590_v11 = vld [vmem:[%s5670_s3] sm:$0xff]  ;;  %v2701_v12 = vld [vmem:[%s5670_s3 + $0x378] sm:$0xff] }
 0x1dc   : > { %2823 = vmatpush.msra.mxu3 %v2644_v29  ;;  %2804 = vmatpush.msra.mxu2 %v2627_v60  ;;  %v2638_v13 = vld [vmem:[%s5670_s3 + $0x180] sm:$0xff]  ;;  %v2669_v19 = vld [vmem:[%s5670_s3 + $0x278] sm:$0xff]  ;;  %v2700_v22 = vld [vmem:[%s5670_s3 + $0x370] sm:$0xff] }
 0x1dd   : > { %2783 = vmatpush.msra.mxu1 %v2612_v24  ;;  %2764 = vmatpush.msra.mxu0 %v2595_v18  ;;  %v2717_v21 = vld [vmem:[%s5670_s3 + $0x3f8] sm:$0xff]  ;;  %v2606_v27 = vld [vmem:[%s5670_s3 + $0x80] sm:$0xff]  ;;  %v2668_v28 = vld [vmem:[%s5670_s3 + $0x270] sm:$0xff] }
 0x1de   : > { %2824 = vmatpush.msra.mxu3 %v2643_v61  ;;  %2805 = vmatpush.msra.mxu2 %v2626_v8  ;;  %v2685_v30 = vld [vmem:[%s5670_s3 + $0x2f8] sm:$0xff]  ;;  %v2699_v31 = vld [vmem:[%s5670_s3 + $0x368] sm:$0xff]  ;;  %v2716_v32 = vld [vmem:[%s5670_s3 + $0x3f0] sm:$0xff] }
 0x1df   : > { %2784 = vmatpush.msra.mxu1 %v2611_v62  ;;  %2765 = vmatpush.msra.mxu0 %v2594_v16  ;;  %v2667_v33 = vld [vmem:[%s5670_s3 + $0x268] sm:$0xff]  ;;  %v2684_v34 = vld [vmem:[%s5670_s3 + $0x2f0] sm:$0xff]  ;;  %v2698_v48 = vld [vmem:[%s5670_s3 + $0x360] sm:$0xff] }
 0x1e0   : > { %2825 = vmatpush.msra.mxu3 %v2642_v26  ;;  %2806 = vmatpush.msra.mxu2 %v2625_v63  ;;  %v2715_v36 = vld [vmem:[%s5670_s3 + $0x3e8] sm:$0xff]  ;;  %v2666_v37 = vld [vmem:[%s5670_s3 + $0x260] sm:$0xff]  ;;  %v2697_v40 = vld [vmem:[%s5670_s3 + $0x358] sm:$0xff] }
 0x1e1   : > { %2785 = vmatpush.msra.mxu1 %v2610_v35  ;;  %2766 = vmatpush.msra.mxu0 %v2593_v0  ;;  %v2683_v44 = vld [vmem:[%s5670_s3 + $0x2e8] sm:$0xff]  ;;  %v2556_v39 = vld [vmem:[%s5669_s2] sm:$0xff]  ;;  %v2665_v49 = vld [vmem:[%s5670_s3 + $0x258] sm:$0xff] }
 0x1e2   : > { %2826 = vmatpush.msra.mxu3 %v2641_v1  ;;  %2807 = vmatpush.msra.mxu2 %v2624_v3  ;;  %v2714_v41 = vld [vmem:[%s5670_s3 + $0x3e0] sm:$0xff]  ;;  %v2560_v42 = vperm.slane %v2556_v39, 0  ;;  %v2561_v45 = vperm.slane %v2556_v39, 1  ;;  %v2562_v46 = vperm.slane %v2556_v39, 2  ;;  %v2563_v47 = vperm.slane %v2556_v39, 3  ;;  %v2696_v51 = vld [vmem:[%s5670_s3 + $0x350] sm:$0xff] }
 0x1e3   : > { %2786 = vmatpush.msra.mxu1 %v2609_v2  ;;  %2767 = vmatpush.msra.mxu0 %v2592_v4  ;;  %v2682_v50 = vld [vmem:[%s5670_s3 + $0x2e0] sm:$0xff]  ;;  %v2565_v52 = vperm.slane %v2556_v39, 5  ;;  %v2566_v53 = vperm.slane %v2556_v39, 6  ;;  %v2713_v14 = vld [vmem:[%s5670_s3 + $0x3d8] sm:$0xff]  ;;  %v2664_v54 = vld [vmem:[%s5670_s3 + $0x250] sm:$0xff]  ;;  %v2564_v57 = vperm.slane %v2556_v39, 4 }
 0x1e4   : > { %2827 = vmatpush.msra.mxu3 %v2640_v5  ;;  %2808 = vmatpush.msra.mxu2 %v2623_v7  ;;  %v2570_v55 = vrot.slane %v2561_v45, 6  ;;  %v2571_v56 = vrot.slane %v2562_v46, 4  ;;  %v2572_v17 = vrot.slane %v2563_v47, 2  ;;  %v2681_v15 = vld [vmem:[%s5670_s3 + $0x2d8] sm:$0xff]  ;;  %v2553_v58 = vld [vmem:[#allocation2] sm:$0xff]  ;;  %v2712_v59 = vld [vmem:[%s5670_s3 + $0x3d0] sm:$0xff] }
 0x1e5   : > { %2787 = vmatpush.msra.mxu1 %v2608_v6  ;;  %2768 = vmatpush.msra.mxu0 %v2591_v43  ;;  %v2695_v20 = vld [vmem:[%s5670_s3 + $0x348] sm:$0xff]  ;;  %v2567_v29 = vperm.slane %v2556_v39, 7  ;;  %v2573_v24 = vrot.slane %v2565_v52, 6  ;;  %v2680_v18 = vld [vmem:[%s5670_s3 + $0x2d0] sm:$0xff]  ;;  %v2694_v61 = vld [vmem:[%s5670_s3 + $0x340] sm:$0xff]  ;;  %v2574_v8 = vrot.slane %v2566_v53, 4 }
 0x1e6   : > { %2828 = vmatpush.msra.mxu3 %v2639_v9  ;;  %2809 = vmatpush.msra.mxu2 %v2622_v38  ;;  %v2576_v25 = vsel %vm2531_vm1, %v2560_v42, %v2570_v55  ;;  %v2577_v23 = vsel %vm2533_vm2, %v2571_v56, %v2572_v17  ;;  %v2663_v60 = vld [vmem:[%s5670_s3 + $0x248] sm:$0xff]  ;;  %v2662_v26 = vld [vmem:[%s5670_s3 + $0x240] sm:$0xff]  ;;  %v2693_v2 = vld [vmem:[%s5670_s3 + $0x338] sm:$0xff] }
 0x1e7   : > { %2788 = vmatpush.msra.mxu1 %v2607_v10  ;;  %2769 = vmatpush.msra.mxu0 %v2590_v11  ;;  %v2578_v62 = vsel %vm2535_vm3, %v2576_v25, %v2577_v23  ;;  %v2711_v16 = vld [vmem:[%s5670_s3 + $0x3c8] sm:$0xff]  ;;  %v2575_v0 = vrot.slane %v2567_v29, 2  ;;  %v2579_v1 = vsel %vm2531_vm1, %v2564_v57, %v2573_v24  ;;  %v2554_v4 = vld [vmem:[#allocation2 + $0x8] sm:$0xff]  ;;  %v2710_v5 = vld [vmem:[%s5670_s3 + $0x3c0] sm:$0xff] }
 0x1e8   : > { %2874 = vmatpush.msrb.mxu2 %v2701_v12  ;;  %2829 = vmatpush.msra.mxu3 %v2638_v13  ;;  %v2679_v35 = vld [vmem:[%s5670_s3 + $0x2c8] sm:$0xff]  ;;  %v2584_v63 = vadd.f32 %v2578_v62, %v2553_v58  ;;  %v2555_v7 = vld [vmem:[#allocation2 + $0x10] sm:$0x3]  ;;  %v2678_v10 = vld [vmem:[%s5670_s3 + $0x2c0] sm:$0xff] }
 0x1e9   : > { %2834 = vmatpush.msrb.mxu0 %v2669_v19  ;;  %2789 = vmatpush.msra.mxu1 %v2606_v27  ;;  %v4493_v3 = vld [vmem:[%s5669_s2 + $0x8] ss:$0 sm:$0xff]  ;;  %v2580_v43 = vsel %vm2533_vm2, %v2574_v8, %v2575_v0  ;;  %v2661_v9 = vld [vmem:[%s5670_s3 + $0x238] sm:$0xff]  ;;  %v2692_v11 = vld [vmem:[%s5670_s3 + $0x330] sm:$0xff] }
 0x1ea   : > { %2894 = vmatpush.msrb.mxu3 %v2717_v21  ;;  %2875 = vmatpush.msrb.mxu2 %v2700_v22  ;;  %v2587_v6 = vmax.f32 %v2584_v63, 0.0  ;;  %v2581_v38 = vsel %vm2535_vm3, %v2579_v1, %v2580_v43  ;;  %v2709_v12 = vld [vmem:[%s5670_s3 + $0x3b8] sm:$0xff]  ;;  %v2660_v19 = vld [vmem:[%s5670_s3 + $0x230] sm:$0xff]  ;;  %v2586_v22 = vadd.f32 %v4493_v3, %v2555_v7  ;;  %v2691_v27 = vld [vmem:[%s5670_s3 + $0x328] sm:$0xff] }
 0x1eb   : > { %2835 = vmatpush.msrb.mxu0 %v2668_v28  ;;  %2854 = vmatpush.msrb.mxu1 %v2685_v30  ;;  %v2585_v13 = vadd.f32 %v2581_v38, %v2554_v4  ;;  %v2677_v21 = vld [vmem:[%s5670_s3 + $0x2b8] sm:$0xff]  ;;  %v2708_v28 = vld [vmem:[%s5670_s3 + $0x3b0] sm:$0xff]  ;;  %v2706_v39 = vld [vmem:[%s5670_s3 + $0x3a0] sm:$0xff] }
 0x1ec   : > { %2876 = vmatpush.msrb.mxu2 %v2699_v31  ;;  %2895 = vmatpush.msrb.mxu3 %v2716_v32  ;;  %2726 = vst [vmem:[#allocation1] ss:$4 sm:$0xff] %v2587_v6  ;;  %v2659_v31 = vld [vmem:[%s5670_s3 + $0x228] sm:$0xff]  ;;  %v2676_v32 = vld [vmem:[%s5670_s3 + $0x2b0] sm:$0xff]  ;;  %v2674_v47 = vld [vmem:[%s5670_s3 + $0x2a0] sm:$0xff] }
 0x1ed   : > { %2836 = vmatpush.msrb.mxu0 %v2667_v33  ;;  %2855 = vmatpush.msrb.mxu1 %v2684_v34  ;;  %v2588_v30 = vmax.f32 %v2585_v13, 0.0  ;;  %v2690_v33 = vld [vmem:[%s5670_s3 + $0x320] sm:$0xff]  ;;  %v2707_v34 = vld [vmem:[%s5670_s3 + $0x3a8] sm:$0xff]  ;;  %v2673_v52 = vld [vmem:[%s5670_s3 + $0x298] sm:$0xff] }
 0x1ee   : > { %2877 = vmatpush.msrb.mxu2 %v2698_v48  ;;  %2896 = vmatpush.msrb.mxu3 %v2715_v36  ;;  %v2658_v48 = vld [vmem:[%s5670_s3 + $0x220] sm:$0xff]  ;;  %v2675_v36 = vld [vmem:[%s5670_s3 + $0x2a8] sm:$0xff]  ;;  %v2672_v55 = vld [vmem:[%s5670_s3 + $0x290] sm:$0xff] }
 0x1ef   : > { %2837 = vmatpush.msrb.mxu0 %v2666_v37  ;;  %2856 = vmatpush.msrb.mxu1 %v2683_v44  ;;  %2728 = vst [vmem:[#allocation1 + $0x20] ss:$4 sm:$0xff] %v2588_v30  ;;  %v2589_v37 = vmax.f32 %v2586_v22, 0.0  ;;  %v2689_v44 = vld [vmem:[%s5670_s3 + $0x318] sm:$0xff]  ;;  %v2687_v53 = vld [vmem:[%s5670_s3 + $0x308] sm:$0xff]  ;;  %v2686_v56 = vld [vmem:[%s5670_s3 + $0x300] sm:$0xff] }
 0x1f0   : > { %2878 = vmatpush.msrb.mxu2 %v2697_v40  ;;  %2897 = vmatpush.msrb.mxu3 %v2714_v41  ;;  %v2657_v40 = vld [vmem:[%s5670_s3 + $0x218] sm:$0xff]  ;;  %v2703_v17 = vld [vmem:[%s5670_s3 + $0x388] sm:$0xff]  ;;  %v2718_v23 = vld [vmem:[%s5670_s3 + $0x400] sm:$0x1f] }
 0x1f1   : > { %2838 = vmatpush.msrb.mxu0 %v2665_v49  ;;  %2857 = vmatpush.msrb.mxu1 %v2682_v50  ;;  %v2688_v49 = vld [vmem:[%s5670_s3 + $0x310] sm:$0xff]  ;;  %v2705_v50 = vld [vmem:[%s5670_s3 + $0x398] sm:$0xff]  ;;  %v2671_v58 = vld [vmem:[%s5670_s3 + $0x288] sm:$0xff] }
 0x1f2   : > { %2879 = vmatpush.msrb.mxu2 %v2696_v51  ;;  %2898 = vmatpush.msrb.mxu3 %v2713_v14  ;;  %v2656_v51 = vld [vmem:[%s5670_s3 + $0x210] sm:$0xff]  ;;  %v2670_v29 = vld [vmem:[%s5670_s3 + $0x280] sm:$0xff] }
 0x1f3   : > { %2839 = vmatpush.msrb.mxu0 %v2664_v54  ;;  %2858 = vmatpush.msrb.mxu1 %v2681_v15  ;;  %v2731_v41 = vld.sshfl [vmem:[#allocation1 + $0x10] sm:$0xff pattern:$0x73625140]  ;;  %v2729_v42 = vld.sshfl [vmem:[#allocation1] sm:$0xff pattern:$0x73625140] }
 0x1f4   : > { %2880 = vmatpush.msrb.mxu2 %v2695_v20  ;;  %2899 = vmatpush.msrb.mxu3 %v2712_v59  ;;  %v2732_v45 = vld.sshfl [vmem:[#allocation1 + $0x18] sm:$0xff pattern:$0x73625140]  ;;  %v2730_v46 = vld.sshfl [vmem:[#allocation1 + $0x8] sm:$0xff pattern:$0x73625140] }
 0x1f5   : > { %2840 = vmatpush.msrb.mxu0 %v2663_v60  ;;  %2859 = vmatpush.msrb.mxu1 %v2680_v18  ;;  %2737 = vst [vmem:[#allocation1] ss:$4 sm:$0xff] %v2589_v37  ;;  %v2704_v14 = vld [vmem:[%s5670_s3 + $0x390] sm:$0xff]  ;;  %v2655_v54 = vld [vmem:[%s5670_s3 + $0x208] sm:$0xff]  ;;  %v2654_v15 = vld [vmem:[%s5670_s3 + $0x200] sm:$0xff] }
 0x1f6   : > { %2881 = vmatpush.msrb.mxu2 %v2694_v61  ;;  %2900 = vmatpush.msrb.mxu3 %v2711_v16  ;;  %v2735_v57 = vld.sshfl [vmem:[#allocation1 + $0x30] sm:$0xff pattern:$0x73625140]  ;;  %v2702_v20 = vld [vmem:[%s5670_s3 + $0x380] sm:$0xff] }
 0x1f7   : > { %2841 = vmatpush.msrb.mxu0 %v2662_v26  ;;  %2860 = vmatpush.msrb.mxu1 %v2679_v35  ;;  %v2733_v59 = vld.sshfl [vmem:[#allocation1 + $0x20] sm:$0xff pattern:$0x73625140]  ;;  %v2736_v25 = vld.sshfl [vmem:[#allocation1 + $0x38] sm:$0xff pattern:$0x73625140] }
 0x1f8   : > { %2882 = vmatpush.msrb.mxu2 %v2693_v2  ;;  %2901 = vmatpush.msrb.mxu3 %v2710_v5  ;;  %v2734_v24 = vld.sshfl [vmem:[#allocation1 + $0x28] sm:$0xff pattern:$0x73625140]  ;;  %v4494_v18 = vld [vmem:[%s5671_s4] ss:$0 sm:$0xff] }
 0x1f9   : > { %2842 = vmatpush.msrb.mxu0 %v2661_v9  ;;  %2861 = vmatpush.msrb.mxu1 %v2678_v10 }
 0x1fa   : > { %2883 = vmatpush.msrb.mxu2 %v2692_v11  ;;  %2902 = vmatpush.msrb.mxu3 %v2709_v12 }
 0x1fb   : > { %2843 = vmatpush.msrb.mxu0 %v2660_v19  ;;  %2862 = vmatpush.msrb.mxu1 %v2677_v21 }
 0x1fc   : > { %2884 = vmatpush.msrb.mxu2 %v2691_v27  ;;  %2903 = vmatpush.msrb.mxu3 %v2708_v28  ;;  %v2738_v60 = vld.sshfl [vmem:[#allocation1] sm:$0xff pattern:$0x73625140] }
 0x1fd   : > { %2844 = vmatpush.msrb.mxu0 %v2659_v31  ;;  %2863 = vmatpush.msrb.mxu1 %v2676_v32 }
 0x1fe   : > { %2885 = vmatpush.msrb.mxu2 %v2690_v33  ;;  %2904 = vmatpush.msrb.mxu3 %v2707_v34 }
 0x1ff   : > { %2810 = vmatmul.f32.vlgmr.msra.gmra.mxu2 %v2731_v41  ;;  %2845 = vmatpush.msrb.mxu0 %v2658_v48 }
 0x200   : > { %2864 = vmatpush.msrb.mxu1 %v2675_v36  ;;  %2886 = vmatpush.msrb.mxu2 %v2689_v44 }
 0x201   : > { %2905 = vmatpush.msrb.mxu3 %v2706_v39  ;;  %2770 = vmatmul.f32.vlgmr.msra.gmra.mxu0 %v2729_v42 }
 0x202   : > { %2830 = vmatmul.f32.vlgmr.msra.gmra.mxu3 %v2732_v45  ;;  %2846 = vmatpush.msrb.mxu0 %v2657_v40 }
 0x203   : > { %2865 = vmatpush.msrb.mxu1 %v2674_v47  ;;  %2887 = vmatpush.msrb.mxu2 %v2688_v49 }
 0x204   : > { %2906 = vmatpush.msrb.mxu3 %v2705_v50  ;;  %2790 = vmatmul.f32.vlgmr.msra.gmra.mxu1 %v2730_v46 }
 0x205   : > { %2847 = vmatpush.msrb.mxu0 %v2656_v51  ;;  %2866 = vmatpush.msrb.mxu1 %v2673_v52 }
 0x206   : > { %2888 = vmatpush.msrb.mxu2 %v2687_v53  ;;  %2907 = vmatpush.msrb.mxu3 %v2704_v14 }
 0x207   : > { %2848 = vmatpush.msrb.mxu0 %v2655_v54  ;;  %2867 = vmatpush.msrb.mxu1 %v2672_v55 }
 0x208   : > { %2889 = vmatpush.msrb.mxu2 %v2686_v56  ;;  %2908 = vmatpush.msrb.mxu3 %v2703_v17 }
 0x209   : > { %2890 = vmatmul.f32.vlgmr.msrb.gmra.mxu2 %v2735_v57  ;;  %2849 = vmatpush.msrb.mxu0 %v2654_v15 }
 0x20a   : > { %2868 = vmatpush.msrb.mxu1 %v2671_v58  ;;  %2909 = vmatpush.msrb.mxu3 %v2702_v20 }
 0x20b   : > { %2850 = vmatmul.f32.vlgmr.msrb.gmra.mxu0 %v2733_v59  ;;  %2910 = vmatmul.f32.vlgmr.msrb.gmra.mxu3 %v2736_v25 }
 0x20c   : > { %4173 = vmatpush.msk.msra.mxu0 %vm2750_vm5, %v2718_v23  ;;  %2869 = vmatpush.msrb.mxu1 %v2670_v29 }
 0x20d   : > { %2870 = vmatmul.f32.vlgmr.msrb.gmra.mxu1 %v2734_v24 }
 0x213   : > { %4174 = vmatmul.msk.f32.vlgmr.msra.gmra.mxu0 %vm2747_vm6, %v2738_v60 }
 0x27e   : > { %v2771_v61 = vpop.f32.mrf.mxu0 }
 0x27f   : > { %v2772_v62 = vadd.f32 %v4494_v18, %v2771_v61 }
 0x281   : > { %v2791_v8 = vpop.f32.mrf.mxu1 }
 0x282   : > { %v2792_v16 = vadd.f32 %v2791_v8, %v2772_v62  ;;  %v2811_v26 = vpop.f32.mrf.mxu2 }
 0x284   : > { %v2812_v35 = vadd.f32 %v2811_v26, %v2792_v16 }
 0x285   : > { %v2831_v63 = vpop.f32.mrf.mxu3 }
 0x286   : > { %v2832_v0 = vadd.f32 %v2831_v63, %v2812_v35 }
 0x288   : > { %v2851_v1 = vpop.f32.mrf.mxu0 }
 0x289   : > { %v2852_v2 = vadd.f32 %v2851_v1, %v2832_v0 }
 0x28a   : > { %v2871_v3 = vpop.f32.mrf.mxu1 }
 0x28b   : > { %v2872_v4 = vadd.f32 %v2871_v3, %v2852_v2 }
 0x28c   : > { %v2891_v5 = vpop.f32.mrf.mxu2 }
 0x28d   : > { %v2892_v6 = vadd.f32 %v2891_v5, %v2872_v4 }
 0x28e   : > { %v2911_v7 = vpop.f32.mrf.mxu3 }
 0x28f   : > { %v2912_v43 = vadd.f32 %v2911_v7, %v2892_v6 }
 0x290   : > { %v2931_v9 = vpop.f32.mrf.mxu0 }
 0x291   : > { %v2932_v10 = vadd.f32 %v2931_v9, %v2912_v43 }
 0x293   : > { %v4175_v38 = vmul.f32 -1.442695, %v2932_v10 }
 0x295   : > { %4495 = vpow2.f32 %v4175_v38 }
 0x29b   : > { %v4496_v11 = vpop.eup %4495 }
 0x29c   : > { %v2937_v12 = vadd.f32 1.0, %v4496_v11 }
 0x29e   : > { %4497 = vrcp.f32 %v2937_v12  ;;  %v2949_v22 = vand.u32 2147483648, %v2937_v12  ;;  %v2947_v28 = vand.u32 2147483647, %v2937_v12  ;;  %vm2943_vm8 = vweird.f32 %v2937_v12 }
 0x2a0   : > { %v2950_v31 = vor.u32 1.1754944e-38, %v2949_v22  ;;  %vm2948_vm11 = vcmp.eq.f32.partialorder %v2947_v28, 8.507059e+37 }
 0x2a4   : > { %v4498_v13 = vpop.eup %4497 }
 0x2a5   : > { %v2939_v19 = vmul.f32 %v4498_v13, %v2937_v12  ;;  %vm2944_vm7 = vweird.f32 %v4498_v13 }
 0x2a6   : > { %vm2945_vm9 = vmor %vm2943_vm8, %vm2944_vm7 }
 0x2a7   : > { %v2940_v21 = vsub.f32 1.0, %v2939_v19 }
 0x2a9   : > { %v2941_v27 = vmul.f32 %v4498_v13, %v2940_v21 }
 0x2ab   : > { %v2942_v30 = vadd.f32 %v4498_v13, %v2941_v27 }
 0x2ad   : > { %v2946_v32 = vsel %vm2945_vm9, %v4498_v13, %v2942_v30 }
 0x2ae   : > { %v2951_v33 = vsel %vm2948_vm11, %v2950_v31, %v2946_v32 }
 0x2af   : > { %2954 = vst.msk [vmem:[#allocation3] sm:$0x3] %vm2953_vm10, %v2951_v33 }
 0x2b0 PF: > { %p4473_p7 = scmp.eq.s32.totalorder %s4577_s19, 2  ;;  %s4540_s17 = smov [#allocation3]  }
 0x2b1   : > { %s2961_s20 = sshll.u32 %s4540_s17, 4  ;;  %s2963_s23 = sshll.u32 %s5672_s5, 4  ;;  %s2962_s20 = int_to_ptr.vmem [resolvable:$true] %s2961_s20  ;;  %s2964_s23 = int_to_ptr.hbm [resolvable:$true] %s2963_s23 }
 0x2b2   : > { %4470 = dma.vmem_to_hbm [thread:$0]  (%p4473_p7), %s2962_s20, 32, %s2964_s23, [#allocation4]  }
 0x2b3   : > { %4532 = dma.done.wait (%p4473_p7), [#allocation4], 32  }
 0x2b4   : > { %4534 = vsyncadd (%p4473_p7), [#allocation4], 4294967264 }
 0x2b5 PF: > { %s16_s18 = sadd.s32 1, %s4537_s18  }
 0x2b6   : > { %p13_p8 = scmp.ge.s32.totalorder %s16_s18, 5  }
 0x2b8   :  { %15 = sbr.rel (!%p13_p8) target bundleno = 1 (0x1), region = 79 }
 0x2bd   :  { %2977 = vsyncpa [#allocation4], 1 }
 0x2be   :  { %2979 = vsyncpa [#allocation4 + $0x1], 1 }

</bundles_post_ra>
